<compile_context>
chip_gen: v5e
topology: v5e:2x2
jax: 0.10.0
libtpu: 0.0.40
codegen_flags: <defaults>
</compile_context>

<pallas_src>
import functools

import jax
import jax.numpy as jnp
from jax.experimental import pallas as pl
from jax.experimental.pallas import tpu as pltpu


# ----------------------------------------------------------------------------
# fused DecoderBlock kernel (runs once; whole batch resident in VMEM)
# ----------------------------------------------------------------------------
def _decoder_block_kernel(
    x_ref,                                   # (B*S, D)      f32
    wq_ref, wk_ref, wv_ref,                  # (D, D)        bf16  (pre-transposed)
    wo_ref,                                  # (H, hd, D)    bf16  (W_O.T, head-grouped)
    g1_ref, b1_ref, g2_ref, b2_ref, g3_ref, b3_ref,   # (1, D) f32
    wf1_ref, bf1_ref,                        # (D, Hid) bf16, (1, Hid) f32
    wf2_ref, bf2_ref,                        # (Hid, D) bf16, (1, D)   f32
    o_ref,                                   # (B*S, D)      f32
    *, batch, seq, n_head, head_dim,
):
    emb = n_head * head_dim
    bs = batch * seq
    inv_scale = 1.0 / jnp.sqrt(jnp.float32(head_dim))

    x = x_ref[...]                           # (BS, D) f32

    def layer_norm(y, g, b):
        # f32 VPU math (kept f32 even though matmuls run in bf16)
        mu = jnp.mean(y, axis=-1, keepdims=True)
        var = jnp.mean(jnp.square(y - mu), axis=-1, keepdims=True)
        return (y - mu) * jax.lax.rsqrt(var + 1e-5) * g + b

    def mha(h):
        # Whole-width projections: M = B*S, K = N = D (3 matmuls instead of 3*H tiny ones).
        hb = h.astype(jnp.bfloat16)
        q = jnp.dot(hb, wq_ref[...], preferred_element_type=jnp.float32)   # (BS, D)
        k = jnp.dot(hb, wk_ref[...], preferred_element_type=jnp.float32)
        v = jnp.dot(hb, wv_ref[...], preferred_element_type=jnp.float32)

        out = jnp.zeros((bs, emb), jnp.float32)
        # The (S,S) score math is per-head by definition: static unroll, batched
        # over B via a single-batch-dim dot_general (flash-attention pattern).
        for hh in range(n_head):
            sl = slice(hh * head_dim, (hh + 1) * head_dim)
            qh = q[:, sl].reshape(batch, seq, head_dim).astype(jnp.bfloat16)
            kh = k[:, sl].reshape(batch, seq, head_dim).astype(jnp.bfloat16)
            vh = v[:, sl].reshape(batch, seq, head_dim).astype(jnp.bfloat16)

            s = jax.lax.dot_general(                         # 'bqe,bke->bqk'
                qh, kh, (((2,), (2,)), ((0,), (0,))),
                preferred_element_type=jnp.float32) * inv_scale
            s = s - jnp.max(s, axis=-1, keepdims=True)       # f32 softmax
            e = jnp.exp(s)
            p = e * pl.reciprocal(jnp.sum(e, axis=-1, keepdims=True), approx=True)

            ho = jax.lax.dot_general(                        # 'bqk,bke->bqe'
                p.astype(jnp.bfloat16), vh, (((2,), (1,)), ((0,), (0,))),
                preferred_element_type=jnp.float32)          # (B, S, hd)

            # No lane-concat of head outputs: contract this head's slice of W_O.T
            # directly into the accumulator  (== cat(heads) @ W_O.T).
            ho2 = ho.reshape(bs, head_dim).astype(jnp.bfloat16)
            out = out + jnp.dot(ho2, wo_ref[hh], preferred_element_type=jnp.float32)
        return out

    # x2 = norm1(MHA(x) + x)
    x2 = layer_norm(mha(x) + x, g1_ref[...], b1_ref[...])
    # attended = norm2(MHA(x2) + x2)   (same attention weights, as in torch)
    attended = layer_norm(mha(x2) + x2, g2_ref[...], b2_ref[...])
    # feed-forward: Linear -> ReLU -> Linear
    hff = jnp.dot(attended.astype(jnp.bfloat16), wf1_ref[...],
                  preferred_element_type=jnp.float32) + bf1_ref[...]
    hff = jnp.maximum(hff, 0.0)
    ff = jnp.dot(hff.astype(jnp.bfloat16), wf2_ref[...],
                 preferred_element_type=jnp.float32) + bf2_ref[...]
    # out = norm3(ff + attended)
    o_ref[...] = layer_norm(ff + attended, g3_ref[...], b3_ref[...])


# ----------------------------------------------------------------------------
# wrapper: weight re-layout (transpose / head-group / bf16 cast) + pallas_call
# ----------------------------------------------------------------------------
def decoder_block_pallas(x, p, n_head):
    B, S, D = x.shape
    hd = D // n_head
    hidden = p["wf1"].shape[0]              # n_head * emb_dim
    BS = B * S

    # ---- layout plumbing done once in the wrapper (free) ----
    bf16 = jnp.bfloat16
    x2d = x.reshape(BS, D)                                   # fold B into M
    wq_t = p["wq"].reshape(D, D).T.astype(bf16)              # (in, out), head-blocked cols
    wk_t = p["wk"].reshape(D, D).T.astype(bf16)
    wv_t = p["wv"].reshape(D, D).T.astype(bf16)
    wo_h = p["wo"].T.reshape(n_head, hd, D).astype(bf16)     # W_O.T grouped by head
    wf1_t = p["wf1"].T.astype(bf16)                          # (D, hidden)
    wf2_t = p["wf2"].T.astype(bf16)                          # (hidden, D)
    g1, b1 = p["g1"].reshape(1, D), p["b1"].reshape(1, D)
    g2, b2 = p["g2"].reshape(1, D), p["b2"].reshape(1, D)
    g3, b3 = p["g3"].reshape(1, D), p["b3"].reshape(1, D)
    bf1 = p["bf1"].reshape(1, hidden)
    bf2 = p["bf2"].reshape(1, D)

    def full2(shape):
        return pl.BlockSpec(shape, lambda i: (0, 0))

    def full3(shape):
        return pl.BlockSpec(shape, lambda i: (0, 0, 0))

    kernel = functools.partial(
        _decoder_block_kernel, batch=B, seq=S, n_head=n_head, head_dim=hd)

    # Whole problem in one grid step: at these shapes the workload is
    # latency-bound, so per-step pipeline overhead and extra HBM traffic are
    # the dominant costs.  (For large B on v7x, add a leading parallel
    # batch-tile axis to use both TensorCores.)
    out2d = pl.pallas_call(
        kernel,
        out_shape=jax.ShapeDtypeStruct((BS, D), jnp.float32),
        grid=(1,),
        in_specs=[
            full2((BS, D)),
            full2((D, D)), full2((D, D)), full2((D, D)),
            full3((n_head, hd, D)),
            full2((1, D)), full2((1, D)), full2((1, D)),
            full2((1, D)), full2((1, D)), full2((1, D)),
            full2((D, hidden)), full2((1, hidden)),
            full2((hidden, D)), full2((1, D)),
        ],
        out_specs=full2((BS, D)),
        compiler_params=pltpu.CompilerParams(dimension_semantics=("arbitrary",)),
    )(x2d, wq_t, wk_t, wv_t, wo_h,
      g1, b1, g2, b2, g3, b3,
      wf1_t, bf1, wf2_t, bf2)
    return out2d.reshape(B, S, D)


# ----------------------------------------------------------------------------
# pure-JAX f32 reference (mirrors the PyTorch DecoderBlock exactly)
# ----------------------------------------------------------------------------
def decoder_block_ref(x, p, n_head):
    D = x.shape[-1]
    hd = D // n_head

    def ln(y, g, b):
        mu = jnp.mean(y, axis=-1, keepdims=True)
        var = jnp.mean((y - mu) ** 2, axis=-1, keepdims=True)
        return (y - mu) / jnp.sqrt(var + 1e-5) * g + b

    def mha(h):
        outs = []
        for i in range(n_head):
            q = h @ p["wq"][i].T
            k = h @ p["wk"][i].T
            v = h @ p["wv"][i].T
            sim = jnp.einsum("bqd,bkd->bqk", q, k) / jnp.sqrt(jnp.float32(hd))
            pr = jax.nn.softmax(sim, axis=-1)
            outs.append(jnp.einsum("bqk,bkd->bqd", pr, v))
        return jnp.concatenate(outs, axis=-1) @ p["wo"].T

    x2 = ln(mha(x) + x, p["g1"], p["b1"])
    att = ln(mha(x2) + x2, p["g2"], p["b2"])
    ff = jnp.maximum(att @ p["wf1"].T + p["bf1"], 0.0) @ p["wf2"].T + p["bf2"]
    return ln(ff + att, p["g3"], p["b3"])


# ----------------------------------------------------------------------------
# deterministic parameters (PyTorch Linear layout: (out_features, in_features))
# ----------------------------------------------------------------------------
def init_params(key, emb_dim, n_head):
    hd = emb_dim // n_head
    hidden = n_head * emb_dim
    ks = jax.random.split(key, 14)

    def nrm(k, shape, scale):
        return (scale * jax.random.normal(k, shape)).astype(jnp.float32)

    return {
        "wq": nrm(ks[0], (n_head, hd, emb_dim), 0.2),
        "wk": nrm(ks[1], (n_head, hd, emb_dim), 0.2),
        "wv": nrm(ks[2], (n_head, hd, emb_dim), 0.2),
        "wo": nrm(ks[3], (emb_dim, emb_dim), 0.2),
        "g1": 1.0 + nrm(ks[4], (emb_dim,), 0.1),
        "b1": nrm(ks[5], (emb_dim,), 0.1),
        "g2": 1.0 + nrm(ks[6], (emb_dim,), 0.1),
        "b2": nrm(ks[7], (emb_dim,), 0.1),
        "g3": 1.0 + nrm(ks[8], (emb_dim,), 0.1),
        "b3": nrm(ks[9], (emb_dim,), 0.1),
        "wf1": nrm(ks[10], (hidden, emb_dim), 0.1),
        "bf1": nrm(ks[11], (hidden,), 0.1),
        "wf2": nrm(ks[12], (emb_dim, hidden), 0.1),
        "bf2": nrm(ks[13], (emb_dim,), 0.1),
    }


if __name__ == "__main__":
    # Small shapes consistent with the module: (B, S, emb_dim), 4 heads.
    B, S, emb_dim, n_head = 2, 8, 32, 4

    key = jax.random.PRNGKey(0)
    k_x, k_p = jax.random.split(key)
    x = jax.random.normal(k_x, (B, S, emb_dim), dtype=jnp.float32)
    params = init_params(k_p, emb_dim, n_head)

    out = jax.block_until_ready(decoder_block_pallas(x, params, n_head))
    ref = jax.block_until_ready(decoder_block_ref(x, params, n_head))

    assert out.shape == (B, S, emb_dim), out.shape
    err = float(jnp.max(jnp.abs(out - ref)))
    # bf16 MXU operands + approx-reciprocal softmax vs. f32 reference.
    assert jnp.allclose(out, ref, atol=5e-2, rtol=5e-2), err
    print("KERNEL_OK")
</pallas_src>

<mosaic_0001>
module attributes {stable_mosaic.version = 11 : i64} {
  func.func @_decoder_block_kernel(%arg0: i32, %arg1: memref<16x32xf32, #tpu.memory_space<vmem>>, %arg2: memref<32x32xbf16, #tpu.memory_space<vmem>>, %arg3: memref<32x32xbf16, #tpu.memory_space<vmem>>, %arg4: memref<32x32xbf16, #tpu.memory_space<vmem>>, %arg5: memref<4x8x32xbf16, #tpu.memory_space<vmem>>, %arg6: memref<1x32xf32, #tpu.memory_space<vmem>>, %arg7: memref<1x32xf32, #tpu.memory_space<vmem>>, %arg8: memref<1x32xf32, #tpu.memory_space<vmem>>, %arg9: memref<1x32xf32, #tpu.memory_space<vmem>>, %arg10: memref<1x32xf32, #tpu.memory_space<vmem>>, %arg11: memref<1x32xf32, #tpu.memory_space<vmem>>, %arg12: memref<32x128xbf16, #tpu.memory_space<vmem>>, %arg13: memref<1x128xf32, #tpu.memory_space<vmem>>, %arg14: memref<128x32xbf16, #tpu.memory_space<vmem>>, %arg15: memref<1x32xf32, #tpu.memory_space<vmem>>, %arg16: memref<16x32xf32, #tpu.memory_space<vmem>>) attributes {dimension_semantics = [#tpu.dimension_semantics<arbitrary>], iteration_bounds = array<i64: 1>, scalar_prefetch = 0 : i64, scratch_operands = 0 : i64, tpu.core_type = #tpu.core_type<tc>, window_params = [{pipeline_mode = #tpu.pipeline_mode<synchronous>, transform_indices = @transform_0, window_bounds = array<i64: 16, 32>}, {pipeline_mode = #tpu.pipeline_mode<synchronous>, transform_indices = @transform_1, window_bounds = array<i64: 32, 32>}, {pipeline_mode = #tpu.pipeline_mode<synchronous>, transform_indices = @transform_2, window_bounds = array<i64: 32, 32>}, {pipeline_mode = #tpu.pipeline_mode<synchronous>, transform_indices = @transform_3, window_bounds = array<i64: 32, 32>}, {pipeline_mode = #tpu.pipeline_mode<synchronous>, transform_indices = @transform_4, window_bounds = array<i64: 4, 8, 32>}, {pipeline_mode = #tpu.pipeline_mode<synchronous>, transform_indices = @transform_5, window_bounds = array<i64: 1, 32>}, {pipeline_mode = #tpu.pipeline_mode<synchronous>, transform_indices = @transform_6, window_bounds = array<i64: 1, 32>}, {pipeline_mode = #tpu.pipeline_mode<synchronous>, transform_indices = @transform_7, window_bounds = array<i64: 1, 32>}, {pipeline_mode = #tpu.pipeline_mode<synchronous>, transform_indices = @transform_8, window_bounds = array<i64: 1, 32>}, {pipeline_mode = #tpu.pipeline_mode<synchronous>, transform_indices = @transform_9, window_bounds = array<i64: 1, 32>}, {pipeline_mode = #tpu.pipeline_mode<synchronous>, transform_indices = @transform_10, window_bounds = array<i64: 1, 32>}, {pipeline_mode = #tpu.pipeline_mode<synchronous>, transform_indices = @transform_11, window_bounds = array<i64: 32, 128>}, {pipeline_mode = #tpu.pipeline_mode<synchronous>, transform_indices = @transform_12, window_bounds = array<i64: 1, 128>}, {pipeline_mode = #tpu.pipeline_mode<synchronous>, transform_indices = @transform_13, window_bounds = array<i64: 128, 32>}, {pipeline_mode = #tpu.pipeline_mode<synchronous>, transform_indices = @transform_14, window_bounds = array<i64: 1, 32>}, {pipeline_mode = #tpu.pipeline_mode<synchronous>, transform_indices = @transform_15, window_bounds = array<i64: 16, 32>}]} {
    %cst = arith.constant 8.000000e+00 : f32
    %0 = math.sqrt %cst : f32
    %cst_0 = arith.constant 1.000000e+00 : f32
    %1 = arith.divf %cst_0, %0 : f32
    %c0 = arith.constant 0 : index
    %c0_1 = arith.constant 0 : index
    %2 = vector.load %arg1[%c0, %c0_1] : memref<16x32xf32, #tpu.memory_space<vmem>>, vector<16x32xf32>
    %3 = arith.truncf %2 : vector<16x32xf32> to vector<16x32xbf16>
    %c0_2 = arith.constant 0 : index
    %c0_3 = arith.constant 0 : index
    %4 = vector.load %arg2[%c0_2, %c0_3] : memref<32x32xbf16, #tpu.memory_space<vmem>>, vector<32x32xbf16>
    %cst_4 = arith.constant dense<0.000000e+00> : vector<16x32xf32>
    %5 = tpu.matmul %3, %4, %cst_4 {dimension_numbers = #tpu.dot_dimension_numbers<[1], [0], [0], [1], [0, 0, 1, 1], [], []>} : vector<16x32xbf16>, vector<32x32xbf16>, vector<16x32xf32> -> vector<16x32xf32>
    %c0_5 = arith.constant 0 : index
    %c0_6 = arith.constant 0 : index
    %6 = vector.load %arg3[%c0_5, %c0_6] : memref<32x32xbf16, #tpu.memory_space<vmem>>, vector<32x32xbf16>
    %cst_7 = arith.constant dense<0.000000e+00> : vector<16x32xf32>
    %7 = tpu.matmul %3, %6, %cst_7 {dimension_numbers = #tpu.dot_dimension_numbers<[1], [0], [0], [1], [0, 0, 1, 1], [], []>} : vector<16x32xbf16>, vector<32x32xbf16>, vector<16x32xf32> -> vector<16x32xf32>
    %c0_8 = arith.constant 0 : index
    %c0_9 = arith.constant 0 : index
    %8 = vector.load %arg4[%c0_8, %c0_9] : memref<32x32xbf16, #tpu.memory_space<vmem>>, vector<32x32xbf16>
    %cst_10 = arith.constant dense<0.000000e+00> : vector<16x32xf32>
    %9 = tpu.matmul %3, %8, %cst_10 {dimension_numbers = #tpu.dot_dimension_numbers<[1], [0], [0], [1], [0, 0, 1, 1], [], []>} : vector<16x32xbf16>, vector<32x32xbf16>, vector<16x32xf32> -> vector<16x32xf32>
    %cst_11 = arith.constant 0.000000e+00 : f32
    %10 = vector.broadcast %cst_11 : f32 to vector<16x32xf32>
    %11 = vector.extract_strided_slice %5 {offsets = [0, 0], sizes = [16, 8], strides = [1, 1]} : vector<16x32xf32> to vector<16x8xf32>
    %12 = vector.shape_cast %11 : vector<16x8xf32> to vector<2x8x8xf32>
    %13 = arith.truncf %12 : vector<2x8x8xf32> to vector<2x8x8xbf16>
    %14 = vector.extract_strided_slice %7 {offsets = [0, 0], sizes = [16, 8], strides = [1, 1]} : vector<16x32xf32> to vector<16x8xf32>
    %15 = vector.shape_cast %14 : vector<16x8xf32> to vector<2x8x8xf32>
    %16 = arith.truncf %15 : vector<2x8x8xf32> to vector<2x8x8xbf16>
    %17 = vector.extract_strided_slice %9 {offsets = [0, 0], sizes = [16, 8], strides = [1, 1]} : vector<16x32xf32> to vector<16x8xf32>
    %18 = vector.shape_cast %17 : vector<16x8xf32> to vector<2x8x8xf32>
    %19 = arith.truncf %18 : vector<2x8x8xf32> to vector<2x8x8xbf16>
    %cst_12 = arith.constant dense<0.000000e+00> : vector<2x8x8xf32>
    %20 = tpu.matmul %13, %16, %cst_12 {dimension_numbers = #tpu.dot_dimension_numbers<[2], [2], [1], [1], [0, 0, 0, 1, 1, 1], [0], [0]>} : vector<2x8x8xbf16>, vector<2x8x8xbf16>, vector<2x8x8xf32> -> vector<2x8x8xf32>
    %21 = vector.broadcast %1 : f32 to vector<2x8x8xf32>
    %22 = arith.mulf %20, %21 : vector<2x8x8xf32>
    %cst_13 = arith.constant dense<0xFF800000> : vector<2x8xf32>
    %23 = vector.multi_reduction <maximumf>, %22, %cst_13 [2] : vector<2x8x8xf32> to vector<2x8xf32>
    %24 = vector.shape_cast %23 : vector<2x8xf32> to vector<2x8x1xf32>
    %25 = vector.broadcast %24 : vector<2x8x1xf32> to vector<2x8x8xf32>
    %26 = arith.subf %22, %25 : vector<2x8x8xf32>
    %27 = math.exp %26 : vector<2x8x8xf32>
    %cst_14 = arith.constant dense<0.000000e+00> : vector<2x8xf32>
    %28 = vector.multi_reduction <add>, %27, %cst_14 [2] : vector<2x8x8xf32> to vector<2x8xf32>
    %29 = vector.shape_cast %28 : vector<2x8xf32> to vector<2x8x1xf32>
    %30 = tpu.reciprocal %29 {approx = true} : vector<2x8x1xf32> -> vector<2x8x1xf32>
    %31 = vector.broadcast %30 : vector<2x8x1xf32> to vector<2x8x8xf32>
    %32 = arith.mulf %27, %31 : vector<2x8x8xf32>
    %33 = arith.truncf %32 : vector<2x8x8xf32> to vector<2x8x8xbf16>
    %cst_15 = arith.constant dense<0.000000e+00> : vector<2x8x8xf32>
    %34 = tpu.matmul %33, %19, %cst_15 {dimension_numbers = #tpu.dot_dimension_numbers<[2], [1], [1], [2], [0, 0, 0, 1, 1, 2], [0], [0]>} : vector<2x8x8xbf16>, vector<2x8x8xbf16>, vector<2x8x8xf32> -> vector<2x8x8xf32>
    %35 = vector.shape_cast %34 : vector<2x8x8xf32> to vector<16x8xf32>
    %36 = arith.truncf %35 : vector<16x8xf32> to vector<16x8xbf16>
    %c0_16 = arith.constant 0 : index
    %c0_17 = arith.constant 0 : index
    %c0_18 = arith.constant 0 : index
    %37 = vector.load %arg5[%c0_16, %c0_17, %c0_18] : memref<4x8x32xbf16, #tpu.memory_space<vmem>>, vector<1x8x32xbf16>
    %38 = vector.shape_cast %37 : vector<1x8x32xbf16> to vector<8x32xbf16>
    %cst_19 = arith.constant dense<0.000000e+00> : vector<16x32xf32>
    %39 = tpu.matmul %36, %38, %cst_19 {dimension_numbers = #tpu.dot_dimension_numbers<[1], [0], [0], [1], [0, 0, 1, 1], [], []>} : vector<16x8xbf16>, vector<8x32xbf16>, vector<16x32xf32> -> vector<16x32xf32>
    %40 = arith.addf %10, %39 : vector<16x32xf32>
    %41 = vector.extract_strided_slice %5 {offsets = [0, 8], sizes = [16, 8], strides = [1, 1]} : vector<16x32xf32> to vector<16x8xf32>
    %42 = vector.shape_cast %41 : vector<16x8xf32> to vector<2x8x8xf32>
    %43 = arith.truncf %42 : vector<2x8x8xf32> to vector<2x8x8xbf16>
    %44 = vector.extract_strided_slice %7 {offsets = [0, 8], sizes = [16, 8], strides = [1, 1]} : vector<16x32xf32> to vector<16x8xf32>
    %45 = vector.shape_cast %44 : vector<16x8xf32> to vector<2x8x8xf32>
    %46 = arith.truncf %45 : vector<2x8x8xf32> to vector<2x8x8xbf16>
    %47 = vector.extract_strided_slice %9 {offsets = [0, 8], sizes = [16, 8], strides = [1, 1]} : vector<16x32xf32> to vector<16x8xf32>
    %48 = vector.shape_cast %47 : vector<16x8xf32> to vector<2x8x8xf32>
    %49 = arith.truncf %48 : vector<2x8x8xf32> to vector<2x8x8xbf16>
    %cst_20 = arith.constant dense<0.000000e+00> : vector<2x8x8xf32>
    %50 = tpu.matmul %43, %46, %cst_20 {dimension_numbers = #tpu.dot_dimension_numbers<[2], [2], [1], [1], [0, 0, 0, 1, 1, 1], [0], [0]>} : vector<2x8x8xbf16>, vector<2x8x8xbf16>, vector<2x8x8xf32> -> vector<2x8x8xf32>
    %51 = vector.broadcast %1 : f32 to vector<2x8x8xf32>
    %52 = arith.mulf %50, %51 : vector<2x8x8xf32>
    %cst_21 = arith.constant dense<0xFF800000> : vector<2x8xf32>
    %53 = vector.multi_reduction <maximumf>, %52, %cst_21 [2] : vector<2x8x8xf32> to vector<2x8xf32>
    %54 = vector.shape_cast %53 : vector<2x8xf32> to vector<2x8x1xf32>
    %55 = vector.broadcast %54 : vector<2x8x1xf32> to vector<2x8x8xf32>
    %56 = arith.subf %52, %55 : vector<2x8x8xf32>
    %57 = math.exp %56 : vector<2x8x8xf32>
    %cst_22 = arith.constant dense<0.000000e+00> : vector<2x8xf32>
    %58 = vector.multi_reduction <add>, %57, %cst_22 [2] : vector<2x8x8xf32> to vector<2x8xf32>
    %59 = vector.shape_cast %58 : vector<2x8xf32> to vector<2x8x1xf32>
    %60 = tpu.reciprocal %59 {approx = true} : vector<2x8x1xf32> -> vector<2x8x1xf32>
    %61 = vector.broadcast %60 : vector<2x8x1xf32> to vector<2x8x8xf32>
    %62 = arith.mulf %57, %61 : vector<2x8x8xf32>
    %63 = arith.truncf %62 : vector<2x8x8xf32> to vector<2x8x8xbf16>
    %cst_23 = arith.constant dense<0.000000e+00> : vector<2x8x8xf32>
    %64 = tpu.matmul %63, %49, %cst_23 {dimension_numbers = #tpu.dot_dimension_numbers<[2], [1], [1], [2], [0, 0, 0, 1, 1, 2], [0], [0]>} : vector<2x8x8xbf16>, vector<2x8x8xbf16>, vector<2x8x8xf32> -> vector<2x8x8xf32>
    %65 = vector.shape_cast %64 : vector<2x8x8xf32> to vector<16x8xf32>
    %66 = arith.truncf %65 : vector<16x8xf32> to vector<16x8xbf16>
    %c1 = arith.constant 1 : index
    %c0_24 = arith.constant 0 : index
    %c0_25 = arith.constant 0 : index
    %67 = vector.load %arg5[%c1, %c0_24, %c0_25] : memref<4x8x32xbf16, #tpu.memory_space<vmem>>, vector<1x8x32xbf16>
    %68 = vector.shape_cast %67 : vector<1x8x32xbf16> to vector<8x32xbf16>
    %cst_26 = arith.constant dense<0.000000e+00> : vector<16x32xf32>
    %69 = tpu.matmul %66, %68, %cst_26 {dimension_numbers = #tpu.dot_dimension_numbers<[1], [0], [0], [1], [0, 0, 1, 1], [], []>} : vector<16x8xbf16>, vector<8x32xbf16>, vector<16x32xf32> -> vector<16x32xf32>
    %70 = arith.addf %40, %69 : vector<16x32xf32>
    %71 = vector.extract_strided_slice %5 {offsets = [0, 16], sizes = [16, 8], strides = [1, 1]} : vector<16x32xf32> to vector<16x8xf32>
    %72 = vector.shape_cast %71 : vector<16x8xf32> to vector<2x8x8xf32>
    %73 = arith.truncf %72 : vector<2x8x8xf32> to vector<2x8x8xbf16>
    %74 = vector.extract_strided_slice %7 {offsets = [0, 16], sizes = [16, 8], strides = [1, 1]} : vector<16x32xf32> to vector<16x8xf32>
    %75 = vector.shape_cast %74 : vector<16x8xf32> to vector<2x8x8xf32>
    %76 = arith.truncf %75 : vector<2x8x8xf32> to vector<2x8x8xbf16>
    %77 = vector.extract_strided_slice %9 {offsets = [0, 16], sizes = [16, 8], strides = [1, 1]} : vector<16x32xf32> to vector<16x8xf32>
    %78 = vector.shape_cast %77 : vector<16x8xf32> to vector<2x8x8xf32>
    %79 = arith.truncf %78 : vector<2x8x8xf32> to vector<2x8x8xbf16>
    %cst_27 = arith.constant dense<0.000000e+00> : vector<2x8x8xf32>
    %80 = tpu.matmul %73, %76, %cst_27 {dimension_numbers = #tpu.dot_dimension_numbers<[2], [2], [1], [1], [0, 0, 0, 1, 1, 1], [0], [0]>} : vector<2x8x8xbf16>, vector<2x8x8xbf16>, vector<2x8x8xf32> -> vector<2x8x8xf32>
    %81 = vector.broadcast %1 : f32 to vector<2x8x8xf32>
    %82 = arith.mulf %80, %81 : vector<2x8x8xf32>
    %cst_28 = arith.constant dense<0xFF800000> : vector<2x8xf32>
    %83 = vector.multi_reduction <maximumf>, %82, %cst_28 [2] : vector<2x8x8xf32> to vector<2x8xf32>
    %84 = vector.shape_cast %83 : vector<2x8xf32> to vector<2x8x1xf32>
    %85 = vector.broadcast %84 : vector<2x8x1xf32> to vector<2x8x8xf32>
    %86 = arith.subf %82, %85 : vector<2x8x8xf32>
    %87 = math.exp %86 : vector<2x8x8xf32>
    %cst_29 = arith.constant dense<0.000000e+00> : vector<2x8xf32>
    %88 = vector.multi_reduction <add>, %87, %cst_29 [2] : vector<2x8x8xf32> to vector<2x8xf32>
    %89 = vector.shape_cast %88 : vector<2x8xf32> to vector<2x8x1xf32>
    %90 = tpu.reciprocal %89 {approx = true} : vector<2x8x1xf32> -> vector<2x8x1xf32>
    %91 = vector.broadcast %90 : vector<2x8x1xf32> to vector<2x8x8xf32>
    %92 = arith.mulf %87, %91 : vector<2x8x8xf32>
    %93 = arith.truncf %92 : vector<2x8x8xf32> to vector<2x8x8xbf16>
    %cst_30 = arith.constant dense<0.000000e+00> : vector<2x8x8xf32>
    %94 = tpu.matmul %93, %79, %cst_30 {dimension_numbers = #tpu.dot_dimension_numbers<[2], [1], [1], [2], [0, 0, 0, 1, 1, 2], [0], [0]>} : vector<2x8x8xbf16>, vector<2x8x8xbf16>, vector<2x8x8xf32> -> vector<2x8x8xf32>
    %95 = vector.shape_cast %94 : vector<2x8x8xf32> to vector<16x8xf32>
    %96 = arith.truncf %95 : vector<16x8xf32> to vector<16x8xbf16>
    %c2 = arith.constant 2 : index
    %c0_31 = arith.constant 0 : index
    %c0_32 = arith.constant 0 : index
    %97 = vector.load %arg5[%c2, %c0_31, %c0_32] : memref<4x8x32xbf16, #tpu.memory_space<vmem>>, vector<1x8x32xbf16>
    %98 = vector.shape_cast %97 : vector<1x8x32xbf16> to vector<8x32xbf16>
    %cst_33 = arith.constant dense<0.000000e+00> : vector<16x32xf32>
    %99 = tpu.matmul %96, %98, %cst_33 {dimension_numbers = #tpu.dot_dimension_numbers<[1], [0], [0], [1], [0, 0, 1, 1], [], []>} : vector<16x8xbf16>, vector<8x32xbf16>, vector<16x32xf32> -> vector<16x32xf32>
    %100 = arith.addf %70, %99 : vector<16x32xf32>
    %101 = vector.extract_strided_slice %5 {offsets = [0, 24], sizes = [16, 8], strides = [1, 1]} : vector<16x32xf32> to vector<16x8xf32>
    %102 = vector.shape_cast %101 : vector<16x8xf32> to vector<2x8x8xf32>
    %103 = arith.truncf %102 : vector<2x8x8xf32> to vector<2x8x8xbf16>
    %104 = vector.extract_strided_slice %7 {offsets = [0, 24], sizes = [16, 8], strides = [1, 1]} : vector<16x32xf32> to vector<16x8xf32>
    %105 = vector.shape_cast %104 : vector<16x8xf32> to vector<2x8x8xf32>
    %106 = arith.truncf %105 : vector<2x8x8xf32> to vector<2x8x8xbf16>
    %107 = vector.extract_strided_slice %9 {offsets = [0, 24], sizes = [16, 8], strides = [1, 1]} : vector<16x32xf32> to vector<16x8xf32>
    %108 = vector.shape_cast %107 : vector<16x8xf32> to vector<2x8x8xf32>
    %109 = arith.truncf %108 : vector<2x8x8xf32> to vector<2x8x8xbf16>
    %cst_34 = arith.constant dense<0.000000e+00> : vector<2x8x8xf32>
    %110 = tpu.matmul %103, %106, %cst_34 {dimension_numbers = #tpu.dot_dimension_numbers<[2], [2], [1], [1], [0, 0, 0, 1, 1, 1], [0], [0]>} : vector<2x8x8xbf16>, vector<2x8x8xbf16>, vector<2x8x8xf32> -> vector<2x8x8xf32>
    %111 = vector.broadcast %1 : f32 to vector<2x8x8xf32>
    %112 = arith.mulf %110, %111 : vector<2x8x8xf32>
    %cst_35 = arith.constant dense<0xFF800000> : vector<2x8xf32>
    %113 = vector.multi_reduction <maximumf>, %112, %cst_35 [2] : vector<2x8x8xf32> to vector<2x8xf32>
    %114 = vector.shape_cast %113 : vector<2x8xf32> to vector<2x8x1xf32>
    %115 = vector.broadcast %114 : vector<2x8x1xf32> to vector<2x8x8xf32>
    %116 = arith.subf %112, %115 : vector<2x8x8xf32>
    %117 = math.exp %116 : vector<2x8x8xf32>
    %cst_36 = arith.constant dense<0.000000e+00> : vector<2x8xf32>
    %118 = vector.multi_reduction <add>, %117, %cst_36 [2] : vector<2x8x8xf32> to vector<2x8xf32>
    %119 = vector.shape_cast %118 : vector<2x8xf32> to vector<2x8x1xf32>
    %120 = tpu.reciprocal %119 {approx = true} : vector<2x8x1xf32> -> vector<2x8x1xf32>
    %121 = vector.broadcast %120 : vector<2x8x1xf32> to vector<2x8x8xf32>
    %122 = arith.mulf %117, %121 : vector<2x8x8xf32>
    %123 = arith.truncf %122 : vector<2x8x8xf32> to vector<2x8x8xbf16>
    %cst_37 = arith.constant dense<0.000000e+00> : vector<2x8x8xf32>
    %124 = tpu.matmul %123, %109, %cst_37 {dimension_numbers = #tpu.dot_dimension_numbers<[2], [1], [1], [2], [0, 0, 0, 1, 1, 2], [0], [0]>} : vector<2x8x8xbf16>, vector<2x8x8xbf16>, vector<2x8x8xf32> -> vector<2x8x8xf32>
    %125 = vector.shape_cast %124 : vector<2x8x8xf32> to vector<16x8xf32>
    %126 = arith.truncf %125 : vector<16x8xf32> to vector<16x8xbf16>
    %c3 = arith.constant 3 : index
    %c0_38 = arith.constant 0 : index
    %c0_39 = arith.constant 0 : index
    %127 = vector.load %arg5[%c3, %c0_38, %c0_39] : memref<4x8x32xbf16, #tpu.memory_space<vmem>>, vector<1x8x32xbf16>
    %128 = vector.shape_cast %127 : vector<1x8x32xbf16> to vector<8x32xbf16>
    %cst_40 = arith.constant dense<0.000000e+00> : vector<16x32xf32>
    %129 = tpu.matmul %126, %128, %cst_40 {dimension_numbers = #tpu.dot_dimension_numbers<[1], [0], [0], [1], [0, 0, 1, 1], [], []>} : vector<16x8xbf16>, vector<8x32xbf16>, vector<16x32xf32> -> vector<16x32xf32>
    %130 = arith.addf %100, %129 : vector<16x32xf32>
    %131 = arith.addf %130, %2 : vector<16x32xf32>
    %c0_41 = arith.constant 0 : index
    %c0_42 = arith.constant 0 : index
    %132 = vector.load %arg6[%c0_41, %c0_42] : memref<1x32xf32, #tpu.memory_space<vmem>>, vector<1x32xf32>
    %c0_43 = arith.constant 0 : index
    %c0_44 = arith.constant 0 : index
    %133 = vector.load %arg7[%c0_43, %c0_44] : memref<1x32xf32, #tpu.memory_space<vmem>>, vector<1x32xf32>
    %cst_45 = arith.constant dense<0.000000e+00> : vector<16xf32>
    %134 = vector.multi_reduction <add>, %131, %cst_45 [1] : vector<16x32xf32> to vector<16xf32>
    %135 = vector.shape_cast %134 : vector<16xf32> to vector<16x1xf32>
    %cst_46 = arith.constant 3.200000e+01 : f32
    %136 = vector.broadcast %cst_46 : f32 to vector<16x1xf32>
    %137 = arith.divf %135, %136 : vector<16x1xf32>
    %138 = vector.broadcast %137 : vector<16x1xf32> to vector<16x32xf32>
    %139 = arith.subf %131, %138 : vector<16x32xf32>
    %140 = arith.mulf %139, %139 : vector<16x32xf32>
    %cst_47 = arith.constant dense<0.000000e+00> : vector<16xf32>
    %141 = vector.multi_reduction <add>, %140, %cst_47 [1] : vector<16x32xf32> to vector<16xf32>
    %142 = vector.shape_cast %141 : vector<16xf32> to vector<16x1xf32>
    %cst_48 = arith.constant 3.200000e+01 : f32
    %143 = vector.broadcast %cst_48 : f32 to vector<16x1xf32>
    %144 = arith.divf %142, %143 : vector<16x1xf32>
    %145 = vector.broadcast %137 : vector<16x1xf32> to vector<16x32xf32>
    %146 = arith.subf %131, %145 : vector<16x32xf32>
    %cst_49 = arith.constant 9.99999974E-6 : f32
    %147 = vector.broadcast %cst_49 : f32 to vector<16x1xf32>
    %148 = arith.addf %144, %147 : vector<16x1xf32>
    %149 = math.rsqrt %148 : vector<16x1xf32>
    %150 = vector.broadcast %149 : vector<16x1xf32> to vector<16x32xf32>
    %151 = arith.mulf %146, %150 : vector<16x32xf32>
    %152 = vector.broadcast %132 : vector<1x32xf32> to vector<16x32xf32>
    %153 = arith.mulf %151, %152 : vector<16x32xf32>
    %154 = vector.broadcast %133 : vector<1x32xf32> to vector<16x32xf32>
    %155 = arith.addf %153, %154 : vector<16x32xf32>
    %156 = arith.truncf %155 : vector<16x32xf32> to vector<16x32xbf16>
    %c0_50 = arith.constant 0 : index
    %c0_51 = arith.constant 0 : index
    %157 = vector.load %arg2[%c0_50, %c0_51] : memref<32x32xbf16, #tpu.memory_space<vmem>>, vector<32x32xbf16>
    %cst_52 = arith.constant dense<0.000000e+00> : vector<16x32xf32>
    %158 = tpu.matmul %156, %157, %cst_52 {dimension_numbers = #tpu.dot_dimension_numbers<[1], [0], [0], [1], [0, 0, 1, 1], [], []>} : vector<16x32xbf16>, vector<32x32xbf16>, vector<16x32xf32> -> vector<16x32xf32>
    %c0_53 = arith.constant 0 : index
    %c0_54 = arith.constant 0 : index
    %159 = vector.load %arg3[%c0_53, %c0_54] : memref<32x32xbf16, #tpu.memory_space<vmem>>, vector<32x32xbf16>
    %cst_55 = arith.constant dense<0.000000e+00> : vector<16x32xf32>
    %160 = tpu.matmul %156, %159, %cst_55 {dimension_numbers = #tpu.dot_dimension_numbers<[1], [0], [0], [1], [0, 0, 1, 1], [], []>} : vector<16x32xbf16>, vector<32x32xbf16>, vector<16x32xf32> -> vector<16x32xf32>
    %c0_56 = arith.constant 0 : index
    %c0_57 = arith.constant 0 : index
    %161 = vector.load %arg4[%c0_56, %c0_57] : memref<32x32xbf16, #tpu.memory_space<vmem>>, vector<32x32xbf16>
    %cst_58 = arith.constant dense<0.000000e+00> : vector<16x32xf32>
    %162 = tpu.matmul %156, %161, %cst_58 {dimension_numbers = #tpu.dot_dimension_numbers<[1], [0], [0], [1], [0, 0, 1, 1], [], []>} : vector<16x32xbf16>, vector<32x32xbf16>, vector<16x32xf32> -> vector<16x32xf32>
    %cst_59 = arith.constant 0.000000e+00 : f32
    %163 = vector.broadcast %cst_59 : f32 to vector<16x32xf32>
    %164 = vector.extract_strided_slice %158 {offsets = [0, 0], sizes = [16, 8], strides = [1, 1]} : vector<16x32xf32> to vector<16x8xf32>
    %165 = vector.shape_cast %164 : vector<16x8xf32> to vector<2x8x8xf32>
    %166 = arith.truncf %165 : vector<2x8x8xf32> to vector<2x8x8xbf16>
    %167 = vector.extract_strided_slice %160 {offsets = [0, 0], sizes = [16, 8], strides = [1, 1]} : vector<16x32xf32> to vector<16x8xf32>
    %168 = vector.shape_cast %167 : vector<16x8xf32> to vector<2x8x8xf32>
    %169 = arith.truncf %168 : vector<2x8x8xf32> to vector<2x8x8xbf16>
    %170 = vector.extract_strided_slice %162 {offsets = [0, 0], sizes = [16, 8], strides = [1, 1]} : vector<16x32xf32> to vector<16x8xf32>
    %171 = vector.shape_cast %170 : vector<16x8xf32> to vector<2x8x8xf32>
    %172 = arith.truncf %171 : vector<2x8x8xf32> to vector<2x8x8xbf16>
    %cst_60 = arith.constant dense<0.000000e+00> : vector<2x8x8xf32>
    %173 = tpu.matmul %166, %169, %cst_60 {dimension_numbers = #tpu.dot_dimension_numbers<[2], [2], [1], [1], [0, 0, 0, 1, 1, 1], [0], [0]>} : vector<2x8x8xbf16>, vector<2x8x8xbf16>, vector<2x8x8xf32> -> vector<2x8x8xf32>
    %174 = vector.broadcast %1 : f32 to vector<2x8x8xf32>
    %175 = arith.mulf %173, %174 : vector<2x8x8xf32>
    %cst_61 = arith.constant dense<0xFF800000> : vector<2x8xf32>
    %176 = vector.multi_reduction <maximumf>, %175, %cst_61 [2] : vector<2x8x8xf32> to vector<2x8xf32>
    %177 = vector.shape_cast %176 : vector<2x8xf32> to vector<2x8x1xf32>
    %178 = vector.broadcast %177 : vector<2x8x1xf32> to vector<2x8x8xf32>
    %179 = arith.subf %175, %178 : vector<2x8x8xf32>
    %180 = math.exp %179 : vector<2x8x8xf32>
    %cst_62 = arith.constant dense<0.000000e+00> : vector<2x8xf32>
    %181 = vector.multi_reduction <add>, %180, %cst_62 [2] : vector<2x8x8xf32> to vector<2x8xf32>
    %182 = vector.shape_cast %181 : vector<2x8xf32> to vector<2x8x1xf32>
    %183 = tpu.reciprocal %182 {approx = true} : vector<2x8x1xf32> -> vector<2x8x1xf32>
    %184 = vector.broadcast %183 : vector<2x8x1xf32> to vector<2x8x8xf32>
    %185 = arith.mulf %180, %184 : vector<2x8x8xf32>
    %186 = arith.truncf %185 : vector<2x8x8xf32> to vector<2x8x8xbf16>
    %cst_63 = arith.constant dense<0.000000e+00> : vector<2x8x8xf32>
    %187 = tpu.matmul %186, %172, %cst_63 {dimension_numbers = #tpu.dot_dimension_numbers<[2], [1], [1], [2], [0, 0, 0, 1, 1, 2], [0], [0]>} : vector<2x8x8xbf16>, vector<2x8x8xbf16>, vector<2x8x8xf32> -> vector<2x8x8xf32>
    %188 = vector.shape_cast %187 : vector<2x8x8xf32> to vector<16x8xf32>
    %189 = arith.truncf %188 : vector<16x8xf32> to vector<16x8xbf16>
    %c0_64 = arith.constant 0 : index
    %c0_65 = arith.constant 0 : index
    %c0_66 = arith.constant 0 : index
    %190 = vector.load %arg5[%c0_64, %c0_65, %c0_66] : memref<4x8x32xbf16, #tpu.memory_space<vmem>>, vector<1x8x32xbf16>
    %191 = vector.shape_cast %190 : vector<1x8x32xbf16> to vector<8x32xbf16>
    %cst_67 = arith.constant dense<0.000000e+00> : vector<16x32xf32>
    %192 = tpu.matmul %189, %191, %cst_67 {dimension_numbers = #tpu.dot_dimension_numbers<[1], [0], [0], [1], [0, 0, 1, 1], [], []>} : vector<16x8xbf16>, vector<8x32xbf16>, vector<16x32xf32> -> vector<16x32xf32>
    %193 = arith.addf %163, %192 : vector<16x32xf32>
    %194 = vector.extract_strided_slice %158 {offsets = [0, 8], sizes = [16, 8], strides = [1, 1]} : vector<16x32xf32> to vector<16x8xf32>
    %195 = vector.shape_cast %194 : vector<16x8xf32> to vector<2x8x8xf32>
    %196 = arith.truncf %195 : vector<2x8x8xf32> to vector<2x8x8xbf16>
    %197 = vector.extract_strided_slice %160 {offsets = [0, 8], sizes = [16, 8], strides = [1, 1]} : vector<16x32xf32> to vector<16x8xf32>
    %198 = vector.shape_cast %197 : vector<16x8xf32> to vector<2x8x8xf32>
    %199 = arith.truncf %198 : vector<2x8x8xf32> to vector<2x8x8xbf16>
    %200 = vector.extract_strided_slice %162 {offsets = [0, 8], sizes = [16, 8], strides = [1, 1]} : vector<16x32xf32> to vector<16x8xf32>
    %201 = vector.shape_cast %200 : vector<16x8xf32> to vector<2x8x8xf32>
    %202 = arith.truncf %201 : vector<2x8x8xf32> to vector<2x8x8xbf16>
    %cst_68 = arith.constant dense<0.000000e+00> : vector<2x8x8xf32>
    %203 = tpu.matmul %196, %199, %cst_68 {dimension_numbers = #tpu.dot_dimension_numbers<[2], [2], [1], [1], [0, 0, 0, 1, 1, 1], [0], [0]>} : vector<2x8x8xbf16>, vector<2x8x8xbf16>, vector<2x8x8xf32> -> vector<2x8x8xf32>
    %204 = vector.broadcast %1 : f32 to vector<2x8x8xf32>
    %205 = arith.mulf %203, %204 : vector<2x8x8xf32>
    %cst_69 = arith.constant dense<0xFF800000> : vector<2x8xf32>
    %206 = vector.multi_reduction <maximumf>, %205, %cst_69 [2] : vector<2x8x8xf32> to vector<2x8xf32>
    %207 = vector.shape_cast %206 : vector<2x8xf32> to vector<2x8x1xf32>
    %208 = vector.broadcast %207 : vector<2x8x1xf32> to vector<2x8x8xf32>
    %209 = arith.subf %205, %208 : vector<2x8x8xf32>
    %210 = math.exp %209 : vector<2x8x8xf32>
    %cst_70 = arith.constant dense<0.000000e+00> : vector<2x8xf32>
    %211 = vector.multi_reduction <add>, %210, %cst_70 [2] : vector<2x8x8xf32> to vector<2x8xf32>
    %212 = vector.shape_cast %211 : vector<2x8xf32> to vector<2x8x1xf32>
    %213 = tpu.reciprocal %212 {approx = true} : vector<2x8x1xf32> -> vector<2x8x1xf32>
    %214 = vector.broadcast %213 : vector<2x8x1xf32> to vector<2x8x8xf32>
    %215 = arith.mulf %210, %214 : vector<2x8x8xf32>
    %216 = arith.truncf %215 : vector<2x8x8xf32> to vector<2x8x8xbf16>
    %cst_71 = arith.constant dense<0.000000e+00> : vector<2x8x8xf32>
    %217 = tpu.matmul %216, %202, %cst_71 {dimension_numbers = #tpu.dot_dimension_numbers<[2], [1], [1], [2], [0, 0, 0, 1, 1, 2], [0], [0]>} : vector<2x8x8xbf16>, vector<2x8x8xbf16>, vector<2x8x8xf32> -> vector<2x8x8xf32>
    %218 = vector.shape_cast %217 : vector<2x8x8xf32> to vector<16x8xf32>
    %219 = arith.truncf %218 : vector<16x8xf32> to vector<16x8xbf16>
    %c1_72 = arith.constant 1 : index
    %c0_73 = arith.constant 0 : index
    %c0_74 = arith.constant 0 : index
    %220 = vector.load %arg5[%c1_72, %c0_73, %c0_74] : memref<4x8x32xbf16, #tpu.memory_space<vmem>>, vector<1x8x32xbf16>
    %221 = vector.shape_cast %220 : vector<1x8x32xbf16> to vector<8x32xbf16>
    %cst_75 = arith.constant dense<0.000000e+00> : vector<16x32xf32>
    %222 = tpu.matmul %219, %221, %cst_75 {dimension_numbers = #tpu.dot_dimension_numbers<[1], [0], [0], [1], [0, 0, 1, 1], [], []>} : vector<16x8xbf16>, vector<8x32xbf16>, vector<16x32xf32> -> vector<16x32xf32>
    %223 = arith.addf %193, %222 : vector<16x32xf32>
    %224 = vector.extract_strided_slice %158 {offsets = [0, 16], sizes = [16, 8], strides = [1, 1]} : vector<16x32xf32> to vector<16x8xf32>
    %225 = vector.shape_cast %224 : vector<16x8xf32> to vector<2x8x8xf32>
    %226 = arith.truncf %225 : vector<2x8x8xf32> to vector<2x8x8xbf16>
    %227 = vector.extract_strided_slice %160 {offsets = [0, 16], sizes = [16, 8], strides = [1, 1]} : vector<16x32xf32> to vector<16x8xf32>
    %228 = vector.shape_cast %227 : vector<16x8xf32> to vector<2x8x8xf32>
    %229 = arith.truncf %228 : vector<2x8x8xf32> to vector<2x8x8xbf16>
    %230 = vector.extract_strided_slice %162 {offsets = [0, 16], sizes = [16, 8], strides = [1, 1]} : vector<16x32xf32> to vector<16x8xf32>
    %231 = vector.shape_cast %230 : vector<16x8xf32> to vector<2x8x8xf32>
    %232 = arith.truncf %231 : vector<2x8x8xf32> to vector<2x8x8xbf16>
    %cst_76 = arith.constant dense<0.000000e+00> : vector<2x8x8xf32>
    %233 = tpu.matmul %226, %229, %cst_76 {dimension_numbers = #tpu.dot_dimension_numbers<[2], [2], [1], [1], [0, 0, 0, 1, 1, 1], [0], [0]>} : vector<2x8x8xbf16>, vector<2x8x8xbf16>, vector<2x8x8xf32> -> vector<2x8x8xf32>
    %234 = vector.broadcast %1 : f32 to vector<2x8x8xf32>
    %235 = arith.mulf %233, %234 : vector<2x8x8xf32>
    %cst_77 = arith.constant dense<0xFF800000> : vector<2x8xf32>
    %236 = vector.multi_reduction <maximumf>, %235, %cst_77 [2] : vector<2x8x8xf32> to vector<2x8xf32>
    %237 = vector.shape_cast %236 : vector<2x8xf32> to vector<2x8x1xf32>
    %238 = vector.broadcast %237 : vector<2x8x1xf32> to vector<2x8x8xf32>
    %239 = arith.subf %235, %238 : vector<2x8x8xf32>
    %240 = math.exp %239 : vector<2x8x8xf32>
    %cst_78 = arith.constant dense<0.000000e+00> : vector<2x8xf32>
    %241 = vector.multi_reduction <add>, %240, %cst_78 [2] : vector<2x8x8xf32> to vector<2x8xf32>
    %242 = vector.shape_cast %241 : vector<2x8xf32> to vector<2x8x1xf32>
    %243 = tpu.reciprocal %242 {approx = true} : vector<2x8x1xf32> -> vector<2x8x1xf32>
    %244 = vector.broadcast %243 : vector<2x8x1xf32> to vector<2x8x8xf32>
    %245 = arith.mulf %240, %244 : vector<2x8x8xf32>
    %246 = arith.truncf %245 : vector<2x8x8xf32> to vector<2x8x8xbf16>
    %cst_79 = arith.constant dense<0.000000e+00> : vector<2x8x8xf32>
    %247 = tpu.matmul %246, %232, %cst_79 {dimension_numbers = #tpu.dot_dimension_numbers<[2], [1], [1], [2], [0, 0, 0, 1, 1, 2], [0], [0]>} : vector<2x8x8xbf16>, vector<2x8x8xbf16>, vector<2x8x8xf32> -> vector<2x8x8xf32>
    %248 = vector.shape_cast %247 : vector<2x8x8xf32> to vector<16x8xf32>
    %249 = arith.truncf %248 : vector<16x8xf32> to vector<16x8xbf16>
    %c2_80 = arith.constant 2 : index
    %c0_81 = arith.constant 0 : index
    %c0_82 = arith.constant 0 : index
    %250 = vector.load %arg5[%c2_80, %c0_81, %c0_82] : memref<4x8x32xbf16, #tpu.memory_space<vmem>>, vector<1x8x32xbf16>
    %251 = vector.shape_cast %250 : vector<1x8x32xbf16> to vector<8x32xbf16>
    %cst_83 = arith.constant dense<0.000000e+00> : vector<16x32xf32>
    %252 = tpu.matmul %249, %251, %cst_83 {dimension_numbers = #tpu.dot_dimension_numbers<[1], [0], [0], [1], [0, 0, 1, 1], [], []>} : vector<16x8xbf16>, vector<8x32xbf16>, vector<16x32xf32> -> vector<16x32xf32>
    %253 = arith.addf %223, %252 : vector<16x32xf32>
    %254 = vector.extract_strided_slice %158 {offsets = [0, 24], sizes = [16, 8], strides = [1, 1]} : vector<16x32xf32> to vector<16x8xf32>
    %255 = vector.shape_cast %254 : vector<16x8xf32> to vector<2x8x8xf32>
    %256 = arith.truncf %255 : vector<2x8x8xf32> to vector<2x8x8xbf16>
    %257 = vector.extract_strided_slice %160 {offsets = [0, 24], sizes = [16, 8], strides = [1, 1]} : vector<16x32xf32> to vector<16x8xf32>
    %258 = vector.shape_cast %257 : vector<16x8xf32> to vector<2x8x8xf32>
    %259 = arith.truncf %258 : vector<2x8x8xf32> to vector<2x8x8xbf16>
    %260 = vector.extract_strided_slice %162 {offsets = [0, 24], sizes = [16, 8], strides = [1, 1]} : vector<16x32xf32> to vector<16x8xf32>
    %261 = vector.shape_cast %260 : vector<16x8xf32> to vector<2x8x8xf32>
    %262 = arith.truncf %261 : vector<2x8x8xf32> to vector<2x8x8xbf16>
    %cst_84 = arith.constant dense<0.000000e+00> : vector<2x8x8xf32>
    %263 = tpu.matmul %256, %259, %cst_84 {dimension_numbers = #tpu.dot_dimension_numbers<[2], [2], [1], [1], [0, 0, 0, 1, 1, 1], [0], [0]>} : vector<2x8x8xbf16>, vector<2x8x8xbf16>, vector<2x8x8xf32> -> vector<2x8x8xf32>
    %264 = vector.broadcast %1 : f32 to vector<2x8x8xf32>
    %265 = arith.mulf %263, %264 : vector<2x8x8xf32>
    %cst_85 = arith.constant dense<0xFF800000> : vector<2x8xf32>
    %266 = vector.multi_reduction <maximumf>, %265, %cst_85 [2] : vector<2x8x8xf32> to vector<2x8xf32>
    %267 = vector.shape_cast %266 : vector<2x8xf32> to vector<2x8x1xf32>
    %268 = vector.broadcast %267 : vector<2x8x1xf32> to vector<2x8x8xf32>
    %269 = arith.subf %265, %268 : vector<2x8x8xf32>
    %270 = math.exp %269 : vector<2x8x8xf32>
    %cst_86 = arith.constant dense<0.000000e+00> : vector<2x8xf32>
    %271 = vector.multi_reduction <add>, %270, %cst_86 [2] : vector<2x8x8xf32> to vector<2x8xf32>
    %272 = vector.shape_cast %271 : vector<2x8xf32> to vector<2x8x1xf32>
    %273 = tpu.reciprocal %272 {approx = true} : vector<2x8x1xf32> -> vector<2x8x1xf32>
    %274 = vector.broadcast %273 : vector<2x8x1xf32> to vector<2x8x8xf32>
    %275 = arith.mulf %270, %274 : vector<2x8x8xf32>
    %276 = arith.truncf %275 : vector<2x8x8xf32> to vector<2x8x8xbf16>
    %cst_87 = arith.constant dense<0.000000e+00> : vector<2x8x8xf32>
    %277 = tpu.matmul %276, %262, %cst_87 {dimension_numbers = #tpu.dot_dimension_numbers<[2], [1], [1], [2], [0, 0, 0, 1, 1, 2], [0], [0]>} : vector<2x8x8xbf16>, vector<2x8x8xbf16>, vector<2x8x8xf32> -> vector<2x8x8xf32>
    %278 = vector.shape_cast %277 : vector<2x8x8xf32> to vector<16x8xf32>
    %279 = arith.truncf %278 : vector<16x8xf32> to vector<16x8xbf16>
    %c3_88 = arith.constant 3 : index
    %c0_89 = arith.constant 0 : index
    %c0_90 = arith.constant 0 : index
    %280 = vector.load %arg5[%c3_88, %c0_89, %c0_90] : memref<4x8x32xbf16, #tpu.memory_space<vmem>>, vector<1x8x32xbf16>
    %281 = vector.shape_cast %280 : vector<1x8x32xbf16> to vector<8x32xbf16>
    %cst_91 = arith.constant dense<0.000000e+00> : vector<16x32xf32>
    %282 = tpu.matmul %279, %281, %cst_91 {dimension_numbers = #tpu.dot_dimension_numbers<[1], [0], [0], [1], [0, 0, 1, 1], [], []>} : vector<16x8xbf16>, vector<8x32xbf16>, vector<16x32xf32> -> vector<16x32xf32>
    %283 = arith.addf %253, %282 : vector<16x32xf32>
    %284 = arith.addf %283, %155 : vector<16x32xf32>
    %c0_92 = arith.constant 0 : index
    %c0_93 = arith.constant 0 : index
    %285 = vector.load %arg8[%c0_92, %c0_93] : memref<1x32xf32, #tpu.memory_space<vmem>>, vector<1x32xf32>
    %c0_94 = arith.constant 0 : index
    %c0_95 = arith.constant 0 : index
    %286 = vector.load %arg9[%c0_94, %c0_95] : memref<1x32xf32, #tpu.memory_space<vmem>>, vector<1x32xf32>
    %cst_96 = arith.constant dense<0.000000e+00> : vector<16xf32>
    %287 = vector.multi_reduction <add>, %284, %cst_96 [1] : vector<16x32xf32> to vector<16xf32>
    %288 = vector.shape_cast %287 : vector<16xf32> to vector<16x1xf32>
    %cst_97 = arith.constant 3.200000e+01 : f32
    %289 = vector.broadcast %cst_97 : f32 to vector<16x1xf32>
    %290 = arith.divf %288, %289 : vector<16x1xf32>
    %291 = vector.broadcast %290 : vector<16x1xf32> to vector<16x32xf32>
    %292 = arith.subf %284, %291 : vector<16x32xf32>
    %293 = arith.mulf %292, %292 : vector<16x32xf32>
    %cst_98 = arith.constant dense<0.000000e+00> : vector<16xf32>
    %294 = vector.multi_reduction <add>, %293, %cst_98 [1] : vector<16x32xf32> to vector<16xf32>
    %295 = vector.shape_cast %294 : vector<16xf32> to vector<16x1xf32>
    %cst_99 = arith.constant 3.200000e+01 : f32
    %296 = vector.broadcast %cst_99 : f32 to vector<16x1xf32>
    %297 = arith.divf %295, %296 : vector<16x1xf32>
    %298 = vector.broadcast %290 : vector<16x1xf32> to vector<16x32xf32>
    %299 = arith.subf %284, %298 : vector<16x32xf32>
    %cst_100 = arith.constant 9.99999974E-6 : f32
    %300 = vector.broadcast %cst_100 : f32 to vector<16x1xf32>
    %301 = arith.addf %297, %300 : vector<16x1xf32>
    %302 = math.rsqrt %301 : vector<16x1xf32>
    %303 = vector.broadcast %302 : vector<16x1xf32> to vector<16x32xf32>
    %304 = arith.mulf %299, %303 : vector<16x32xf32>
    %305 = vector.broadcast %285 : vector<1x32xf32> to vector<16x32xf32>
    %306 = arith.mulf %304, %305 : vector<16x32xf32>
    %307 = vector.broadcast %286 : vector<1x32xf32> to vector<16x32xf32>
    %308 = arith.addf %306, %307 : vector<16x32xf32>
    %309 = arith.truncf %308 : vector<16x32xf32> to vector<16x32xbf16>
    %c0_101 = arith.constant 0 : index
    %c0_102 = arith.constant 0 : index
    %310 = vector.load %arg12[%c0_101, %c0_102] : memref<32x128xbf16, #tpu.memory_space<vmem>>, vector<32x128xbf16>
    %cst_103 = arith.constant dense<0.000000e+00> : vector<16x128xf32>
    %311 = tpu.matmul %309, %310, %cst_103 {dimension_numbers = #tpu.dot_dimension_numbers<[1], [0], [0], [1], [0, 0, 1, 1], [], []>} : vector<16x32xbf16>, vector<32x128xbf16>, vector<16x128xf32> -> vector<16x128xf32>
    %c0_104 = arith.constant 0 : index
    %c0_105 = arith.constant 0 : index
    %312 = vector.load %arg13[%c0_104, %c0_105] : memref<1x128xf32, #tpu.memory_space<vmem>>, vector<1x128xf32>
    %313 = vector.broadcast %312 : vector<1x128xf32> to vector<16x128xf32>
    %314 = arith.addf %311, %313 : vector<16x128xf32>
    %cst_106 = arith.constant 0.000000e+00 : f32
    %315 = vector.broadcast %cst_106 : f32 to vector<16x128xf32>
    %316 = arith.maximumf %314, %315 : vector<16x128xf32>
    %317 = arith.truncf %316 : vector<16x128xf32> to vector<16x128xbf16>
    %c0_107 = arith.constant 0 : index
    %c0_108 = arith.constant 0 : index
    %318 = vector.load %arg14[%c0_107, %c0_108] : memref<128x32xbf16, #tpu.memory_space<vmem>>, vector<128x32xbf16>
    %cst_109 = arith.constant dense<0.000000e+00> : vector<16x32xf32>
    %319 = tpu.matmul %317, %318, %cst_109 {dimension_numbers = #tpu.dot_dimension_numbers<[1], [0], [0], [1], [0, 0, 1, 1], [], []>} : vector<16x128xbf16>, vector<128x32xbf16>, vector<16x32xf32> -> vector<16x32xf32>
    %c0_110 = arith.constant 0 : index
    %c0_111 = arith.constant 0 : index
    %320 = vector.load %arg15[%c0_110, %c0_111] : memref<1x32xf32, #tpu.memory_space<vmem>>, vector<1x32xf32>
    %321 = vector.broadcast %320 : vector<1x32xf32> to vector<16x32xf32>
    %322 = arith.addf %319, %321 : vector<16x32xf32>
    %323 = arith.addf %322, %308 : vector<16x32xf32>
    %c0_112 = arith.constant 0 : index
    %c0_113 = arith.constant 0 : index
    %324 = vector.load %arg10[%c0_112, %c0_113] : memref<1x32xf32, #tpu.memory_space<vmem>>, vector<1x32xf32>
    %c0_114 = arith.constant 0 : index
    %c0_115 = arith.constant 0 : index
    %325 = vector.load %arg11[%c0_114, %c0_115] : memref<1x32xf32, #tpu.memory_space<vmem>>, vector<1x32xf32>
    %cst_116 = arith.constant dense<0.000000e+00> : vector<16xf32>
    %326 = vector.multi_reduction <add>, %323, %cst_116 [1] : vector<16x32xf32> to vector<16xf32>
    %327 = vector.shape_cast %326 : vector<16xf32> to vector<16x1xf32>
    %cst_117 = arith.constant 3.200000e+01 : f32
    %328 = vector.broadcast %cst_117 : f32 to vector<16x1xf32>
    %329 = arith.divf %327, %328 : vector<16x1xf32>
    %330 = vector.broadcast %329 : vector<16x1xf32> to vector<16x32xf32>
    %331 = arith.subf %323, %330 : vector<16x32xf32>
    %332 = arith.mulf %331, %331 : vector<16x32xf32>
    %cst_118 = arith.constant dense<0.000000e+00> : vector<16xf32>
    %333 = vector.multi_reduction <add>, %332, %cst_118 [1] : vector<16x32xf32> to vector<16xf32>
    %334 = vector.shape_cast %333 : vector<16xf32> to vector<16x1xf32>
    %cst_119 = arith.constant 3.200000e+01 : f32
    %335 = vector.broadcast %cst_119 : f32 to vector<16x1xf32>
    %336 = arith.divf %334, %335 : vector<16x1xf32>
    %337 = vector.broadcast %329 : vector<16x1xf32> to vector<16x32xf32>
    %338 = arith.subf %323, %337 : vector<16x32xf32>
    %cst_120 = arith.constant 9.99999974E-6 : f32
    %339 = vector.broadcast %cst_120 : f32 to vector<16x1xf32>
    %340 = arith.addf %336, %339 : vector<16x1xf32>
    %341 = math.rsqrt %340 : vector<16x1xf32>
    %342 = vector.broadcast %341 : vector<16x1xf32> to vector<16x32xf32>
    %343 = arith.mulf %338, %342 : vector<16x32xf32>
    %344 = vector.broadcast %324 : vector<1x32xf32> to vector<16x32xf32>
    %345 = arith.mulf %343, %344 : vector<16x32xf32>
    %346 = vector.broadcast %325 : vector<1x32xf32> to vector<16x32xf32>
    %347 = arith.addf %345, %346 : vector<16x32xf32>
    %c0_121 = arith.constant 0 : index
    %c0_122 = arith.constant 0 : index
    %348 = vector.load %arg16[%c0_121, %c0_122] : memref<16x32xf32, #tpu.memory_space<vmem>>, vector<16x32xf32>
    tpu.vector_store %arg16[%c0_121, %c0_122], %347 {strides = array<i32>} : memref<16x32xf32, #tpu.memory_space<vmem>>, vector<16x32xf32>,
    return
  }
  func.func @transform_0(%arg0: i32) -> (i32, i32) {
    %c0_i32 = arith.constant 0 : i32
    %c0_i32_0 = arith.constant 0 : i32
    %c0_i32_1 = arith.constant 0 : i32
    return %c0_i32, %c0_i32_0 : i32, i32
  }
  func.func @transform_1(%arg0: i32) -> (i32, i32) {
    %c0_i32 = arith.constant 0 : i32
    %c0_i32_0 = arith.constant 0 : i32
    %c0_i32_1 = arith.constant 0 : i32
    return %c0_i32, %c0_i32_0 : i32, i32
  }
  func.func @transform_2(%arg0: i32) -> (i32, i32) {
    %c0_i32 = arith.constant 0 : i32
    %c0_i32_0 = arith.constant 0 : i32
    %c0_i32_1 = arith.constant 0 : i32
    return %c0_i32, %c0_i32_0 : i32, i32
  }
  func.func @transform_3(%arg0: i32) -> (i32, i32) {
    %c0_i32 = arith.constant 0 : i32
    %c0_i32_0 = arith.constant 0 : i32
    %c0_i32_1 = arith.constant 0 : i32
    return %c0_i32, %c0_i32_0 : i32, i32
  }
  func.func @transform_4(%arg0: i32) -> (i32, i32, i32) {
    %c0_i32 = arith.constant 0 : i32
    %c0_i32_0 = arith.constant 0 : i32
    %c0_i32_1 = arith.constant 0 : i32
    %c0_i32_2 = arith.constant 0 : i32
    return %c0_i32, %c0_i32_0, %c0_i32_1 : i32, i32, i32
  }
  func.func @transform_5(%arg0: i32) -> (i32, i32) {
    %c0_i32 = arith.constant 0 : i32
    %c0_i32_0 = arith.constant 0 : i32
    %c0_i32_1 = arith.constant 0 : i32
    return %c0_i32, %c0_i32_0 : i32, i32
  }
  func.func @transform_6(%arg0: i32) -> (i32, i32) {
    %c0_i32 = arith.constant 0 : i32
    %c0_i32_0 = arith.constant 0 : i32
    %c0_i32_1 = arith.constant 0 : i32
    return %c0_i32, %c0_i32_0 : i32, i32
  }
  func.func @transform_7(%arg0: i32) -> (i32, i32) {
    %c0_i32 = arith.constant 0 : i32
    %c0_i32_0 = arith.constant 0 : i32
    %c0_i32_1 = arith.constant 0 : i32
    return %c0_i32, %c0_i32_0 : i32, i32
  }
  func.func @transform_8(%arg0: i32) -> (i32, i32) {
    %c0_i32 = arith.constant 0 : i32
    %c0_i32_0 = arith.constant 0 : i32
    %c0_i32_1 = arith.constant 0 : i32
    return %c0_i32, %c0_i32_0 : i32, i32
  }
  func.func @transform_9(%arg0: i32) -> (i32, i32) {
    %c0_i32 = arith.constant 0 : i32
    %c0_i32_0 = arith.constant 0 : i32
    %c0_i32_1 = arith.constant 0 : i32
    return %c0_i32, %c0_i32_0 : i32, i32
  }
  func.func @transform_10(%arg0: i32) -> (i32, i32) {
    %c0_i32 = arith.constant 0 : i32
    %c0_i32_0 = arith.constant 0 : i32
    %c0_i32_1 = arith.constant 0 : i32
    return %c0_i32, %c0_i32_0 : i32, i32
  }
  func.func @transform_11(%arg0: i32) -> (i32, i32) {
    %c0_i32 = arith.constant 0 : i32
    %c0_i32_0 = arith.constant 0 : i32
    %c0_i32_1 = arith.constant 0 : i32
    return %c0_i32, %c0_i32_0 : i32, i32
  }
  func.func @transform_12(%arg0: i32) -> (i32, i32) {
    %c0_i32 = arith.constant 0 : i32
    %c0_i32_0 = arith.constant 0 : i32
    %c0_i32_1 = arith.constant 0 : i32
    return %c0_i32, %c0_i32_0 : i32, i32
  }
  func.func @transform_13(%arg0: i32) -> (i32, i32) {
    %c0_i32 = arith.constant 0 : i32
    %c0_i32_0 = arith.constant 0 : i32
    %c0_i32_1 = arith.constant 0 : i32
    return %c0_i32, %c0_i32_0 : i32, i32
  }
  func.func @transform_14(%arg0: i32) -> (i32, i32) {
    %c0_i32 = arith.constant 0 : i32
    %c0_i32_0 = arith.constant 0 : i32
    %c0_i32_1 = arith.constant 0 : i32
    return %c0_i32, %c0_i32_0 : i32, i32
  }
  func.func @transform_15(%arg0: i32) -> (i32, i32) {
    %c0_i32 = arith.constant 0 : i32
    %c0_i32_0 = arith.constant 0 : i32
    %c0_i32_1 = arith.constant 0 : i32
    return %c0_i32, %c0_i32_0 : i32, i32
  }
}

</mosaic_0001>

<bundles_post_ra>
// kernel: tpu_custom_call.1
= control target key start
LH: loop header
LB: loop body
LE: loop exit
PB: predicated region body
PF: predicated region fallthrough
CT: control target
= control target key end

     0   :  { %20 = vsyncpa [#allocation3], 0  ;;  %s2403_s0 = inlined_call_operand.vmem [shape: f32[16,32], index: 0, kind: input, shape index: {}]   ;;  %s2404_s1 = inlined_call_operand.vmem [shape: bf16[32,32], index: 1, kind: input, shape index: {}]   ;;  %s2405_s2 = inlined_call_operand.vmem [shape: bf16[32,32], index: 2, kind: input, shape index: {}]   ;;  %s2406_s3 = inlined_call_operand.vmem [shape: bf16[32,32], index: 3, kind: input, shape index: {}]   ;;  %s2407_s4 = inlined_call_operand.vmem [shape: bf16[4,8,32], index: 4, kind: input, shape index: {}]   ;;  %s2408_s5 = inlined_call_operand.vmem [shape: f32[1,32], index: 5, kind: input, shape index: {}]   ;;  %s2409_s6 = inlined_call_operand.vmem [shape: f32[1,32], index: 6, kind: input, shape index: {}]   ;;  %s2410_s7 = inlined_call_operand.vmem [shape: f32[1,32], index: 7, kind: input, shape index: {}]   ;;  %s2411_s8 = inlined_call_operand.vmem [shape: f32[1,32], index: 8, kind: input, shape index: {}]   ;;  %s2412_s9 = inlined_call_operand.vmem [shape: f32[1,32], index: 9, kind: input, shape index: {}]   ;;  %s2413_s10 = inlined_call_operand.vmem [shape: f32[1,32], index: 10, kind: input, shape index: {}]   ;;  %s2414_s11 = inlined_call_operand.hbm [shape: bf16[32,128], index: 11, kind: input, shape index: {}]   ;;  %s2415_s12 = inlined_call_operand.vmem [shape: f32[1,128], index: 12, kind: input, shape index: {}]   ;;  %s2416_s13 = inlined_call_operand.vmem [shape: bf16[128,32], index: 13, kind: input, shape index: {}]   ;;  %s2417_s14 = inlined_call_operand.vmem [shape: f32[1,32], index: 14, kind: input, shape index: {}]   ;;  %s2418_s15 = inlined_call_operand.hbm [shape: f32[16,32], index: 15, kind: output, shape index: {}]  }
   0x1   :  { %21 = vsyncpa [#allocation4], 0  ;;  %s48_s20 = sshll.u32 %s2414_s11, 4  ;;  %s1923_s21 = smov [#allocation2]   ;;  %s49_s20 = int_to_ptr.hbm [resolvable:$true] %s48_s20 }
   0x2   :  { %s50_s22 = sshll.u32 %s1923_s21, 4  ;;  %s1924_s23 = smov 64   ;;  %s51_s22 = int_to_ptr.vmem [resolvable:$true] %s50_s22 }
   0x3   :  { %s1925_s24 = smov 4  }
   0x4   :  { %56 = dma.hbm_to_vmem [thread:$0]  %s49_s20, 256, %s51_s22, [#allocation3], %s1924_s23, %s1924_s23, %s1925_s24  }
   0x5   :  { %1919 = dma.done.wait [#allocation3], 256  }
   0x6   :  { %1920 = vsyncadd [#allocation3], 4294967040  ;;  %v2019_v0 = vld [vmem:[%s2404_s1 + $0x8] sm:$0xff]  ;;  %v2029_v2 = vld [vmem:[%s2404_s1] sm:$0xff]  ;;  %vm87_vm0 = vcmask 261120   ;;  %vm171_vm1 = vcmask 64512  }
   0x7   :  { %v2024_v1 = vld [vmem:[%s2405_s2 + $0x8] sm:$0xff]  ;;  %v2034_v3 = vld [vmem:[%s2405_s2] sm:$0xff]  ;;  %97 = vmatpush.bf16.msra.mxu0 %v2019_v0  ;;  %vm239_vm2 = vcmask 1043456   ;;  %s1928_s23 = smov 104   ;;  %s1632_s20 = sshll.u32 %s2418_s15, 4  ;;  %s1633_s20 = int_to_ptr.hbm [resolvable:$true] %s1632_s20 }
   0x8   :  { %v2039_v4 = vld [vmem:[%s2403_s0] sm:$0xff]  ;;  %v2044_v5 = vld [vmem:[%s2403_s0 + $0x8] sm:$0xff]  ;;  %127 = vmatpush.bf16.msra.mxu1 %v2024_v1  ;;  %s1926_s0 = smov 120  }
   0x9   :  { %v70_v6 = vpack.c.bf16 %v2044_v5, %v2039_v4  ;;  %v2077_v25 = vld [vmem:[%s2406_s3 + $0x8] sm:$0xff]  ;;  %v2083_v26 = vld [vmem:[%s2406_s3] sm:$0xff]  ;;  %s1927_s3 = smov 112  }
   0xa   :  { %157 = vmatpush.bf16.msra.mxu2 %v2077_v25 }
   0xb   :  { %98 = vmatpush.bf16.msra.mxu0 %v2029_v2 }
   0xc   :  { %128 = vmatpush.bf16.msra.mxu1 %v2034_v3 }
   0xe   :  { %1653 = vmatmul.msk.bf16.vlgmr.msra.gmra.mxu0 %vm87_vm0, %v70_v6  ;;  %158 = vmatpush.bf16.msra.mxu2 %v2083_v26 }
   0xf   :  { %1662 = vmatmul.msk.bf16.vlgmr.msra.gmra.mxu1 %vm87_vm0, %v70_v6 }
  0x11   :  { %1671 = vmatmul.msk.bf16.vlgmr.msra.gmra.mxu2 %vm87_vm0, %v70_v6 }
  0x8b   :  { %v100_v7 = vpop.f32.mrf.mxu0 }
  0x8c   :  { %v130_v8 = vpop.f32.mrf.mxu1  ;;  %v165_v10 = vpack.c.bf16 %v100_v7, %v100_v7 }
  0x8d   :  { %v167_v9 = vpack.c.bf16 %v130_v8, %v130_v8 }
  0x8e   :  { %v278_v14 = vunpack.c.l.b16 %v165_v10 }
  0x8f   :  { %v283_v11 = vunpack.c.l.b16 %v167_v9  ;;  %v176_v12 = vsel %vm171_vm1, %v167_v9, 0 }
  0x90   :  { %185 = vmatpush.bf16.xpose.msra.mxu3 %v176_v12  ;;  %v2059_v18 = vpack.c.b16 %v278_v14, %v278_v14 }
  0x91   :  { %v2055_v13 = vpack.c.b16 %v283_v11, %v283_v11 }
  0x93   :  { %285 = vrot.lane.b32.xlu0 %v2055_v13, %s1926_s0  ;;  %v102_v17 = vpop.f32.mrf.mxu0 }
  0x94   :  { %v132_v15 = vpop.f32.mrf.mxu1  ;;  %v166_v21 = vpack.c.bf16 %v102_v17, %v102_v17  ;;  %v160_v50 = vpop.f32.mrf.mxu2 }
  0x95   :  { %v168_v16 = vpack.c.bf16 %v132_v15, %v132_v15  ;;  %v169_v52 = vpack.c.bf16 %v160_v50, %v160_v50 }
  0x96   :  { %v307_v23 = vunpack.c.l.b16 %v166_v21 }
  0x97   :  { %v312_v19 = vunpack.c.l.b16 %v168_v16  ;;  %1672 = vmatmul.msk.bf16.vlgmr.msra.gmra.mxu3 %vm171_vm1, %v165_v10  ;;  %v195_v20 = vsel %vm171_vm1, %v168_v16, 0  ;;  %v362_v53 = vunpack.c.l.b16 %v169_v52  ;;  %v241_v58 = vsel %vm239_vm2, %v169_v52, 0 }
  0x98   :  { %204 = vmatpush.bf16.xpose.msrb.mxu0 %v195_v20  ;;  %v2070_v24 = vpack.c.b16 %v307_v23, %v307_v23  ;;  %250 = vmatpush.bf16.msrb.mxu1 %v241_v58 }
  0x99   :  { %v2063_v22 = vpack.c.b16 %v312_v19, %v312_v19  ;;  %v2095_v55 = vpack.c.b16 %v362_v53, %v362_v53 }
  0x9b   :  { %314 = vrot.lane.b32.xlu1 %v2063_v22, %s1926_s0  ;;  %280 = vrot.lane.b32.xlu0 %v2059_v18, %s1926_s0 }
  0x9c   :  { %v162_v59 = vpop.f32.mrf.mxu2 }
  0x9d   :  { %v170_v60 = vpack.c.bf16 %v162_v59, %v162_v59 }
  0x9f   :  { %1673 = vmatmul.msk.bf16.vlgmr.msrb.gmra.mxu0 %vm171_vm1, %v166_v21  ;;  %v260_v63 = vsel %vm239_vm2, %v170_v60, 0 }
  0xa0   :  { %269 = vmatpush.bf16.msrb.mxu2 %v260_v63  ;;  %v276_v63 = vld [vmem:[%s2407_s4] sm:$0xf] }
  0xa3   :  { %309 = vrot.lane.b32.xlu1 %v2070_v24, %s1926_s0 }
 0x105   :  { %v286_v27 = vpop.permute.xlu0 %285 }
 0x106   :  { %v291_v28 = vsel %vm171_vm1, %v286_v27, 0 }
 0x107   :  { %300 = vmatpush.bf16.xpose.msrb.mxu3 %v291_v28 }
 0x10d   :  { %v315_v29 = vpop.permute.xlu1 %314  ;;  %v281_v30 = vpop.permute.xlu0 %280 }
 0x10e   :  { %v320_v31 = vsel %vm171_vm1, %v315_v29, 0  ;;  %1676 = vmatmul.msk.bf16.vlgmr.msrb.gmra.mxu3 %vm171_vm1, %v281_v30 }
 0x10f   :  { %329 = vmatpush.bf16.xpose.msra.mxu0 %v320_v31 }
 0x115   :  { %v310_v32 = vpop.permute.xlu1 %309 }
 0x116   :  { %1677 = vmatmul.msk.bf16.vlgmr.msra.gmra.mxu0 %vm171_vm1, %v310_v32 }
 0x11a   :  { %v187_v33 = vpop.f32.mrf.mxu3 }
 0x11b   :  { %v210_v34 = vmul.f32 0.35355338, %v187_v33 }
 0x11c   :  { %v206_v35 = vpop.f32.mrf.mxu0 }
 0x11d   :  { %v212_v36 = vsel %vm171_vm1, %v210_v34, -inf  ;;  %v211_v56 = vmul.f32 0.35355338, %v206_v35 }
 0x11e   :  { %213 = vmax.xlane.f32.xlu2 %v212_v36 }
 0x11f   :  { %v215_v57 = vsel %vm171_vm1, %v211_v56, -inf }
 0x122   :  { %v189_v37 = vpop.f32.mrf.mxu3 }
 0x124   :  { %v208_v38 = vpop.f32.mrf.mxu0 }
 0x191   :  { %v214_v39 = vpop.xlane.xlu2 %213  ;;  %v302_v40 = vpop.f32.mrf.mxu3 }
 0x192   :  { %v218_v41 = vsub.f32 %v210_v34, %v214_v39  ;;  %v335_v42 = vmul.f32 0.35355338, %v302_v40  ;;  %v386_v34 = vunpack.c.l.b16 %v170_v60 }
 0x193   :  { %v331_v43 = vpop.f32.mrf.mxu0 }
 0x194   :  { %v220_v44 = vmul.f32 1.442695, %v218_v41  ;;  %v337_v45 = vsel %vm171_vm1, %v335_v42, -inf  ;;  %v336_v51 = vmul.f32 0.35355338, %v331_v43  ;;  %v2114_v35 = vpack.c.b16 %v386_v34, %v386_v34 }
 0x195   :  { %338 = vmax.xlane.f32.xlu2 %v337_v45  ;;  %v1680_v45 = vld [vmem:[%s2407_s4 + $0x4] sm:$0xf] }
 0x196   :  { %1793 = vpow2.f32 %v220_v44  ;;  %v340_v54 = vsel %vm171_vm1, %v336_v51, -inf }
 0x199   :  { %v304_v46 = vpop.f32.mrf.mxu3 }
 0x19b   :  { %v333_v47 = vpop.f32.mrf.mxu0 }
 0x19c   :  { %v1794_v48 = vpop.eup %1793 }
 0x19d   :  { %v224_v49 = vsel %vm171_vm1, %v1794_v48, 0.0 }
 0x19e   :  { %225 = vadd.xlane.f32.xlu0 %v224_v49 }
 0x1a6   :  { %341 = vmax.xlane.f32.xlu0 %v340_v54 }
 0x1ad   :  { %364 = vrot.lane.b32.xlu2 %v2095_v55, %s1926_s0 }
 0x1b5   :  { %454 = vrot.lane.b32.xlu2 %v2055_v13, %s1927_s3 }
 0x1bd   :  { %452 = vrot.lane.b32.xlu2 %v2059_v18, %s1927_s3 }
 0x1e6   :  { %216 = vmax.xlane.f32.xlu2 %v215_v57 }
 0x208   :  { %v339_v61 = vpop.xlane.xlu2 %338 }
 0x209   :  { %v343_v62 = vsub.f32 %v335_v42, %v339_v61 }
 0x20b   :  { %v345_v6 = vmul.f32 1.442695, %v343_v62 }
 0x20d   :  { %1795 = vpow2.f32 %v345_v6  ;;  %v2150_v6 = vsel %vm239_vm2, %v276_v63, 0 }
 0x20e   :  { %445 = vmatpush.bf16.msrb.mxu0 %v2150_v6 }
 0x210   :  { %v365_v7 = vpop.permute.xlu2 %364 }
 0x211   :  { %v370_v8 = vsel %vm239_vm2, %v365_v7, 0  ;;  %v226_v9 = vpop.xlane.xlu0 %225 }
 0x212   :  { %1797 = vrcp.f32 %v226_v9  ;;  %379 = vmatpush.bf16.msra.mxu1 %v370_v8 }
 0x213   :  { %v1796_v10 = vpop.eup %1795 }
 0x214   :  { %v349_v11 = vsel %vm171_vm1, %v1796_v10, 0.0 }
 0x215   :  { %350 = vadd.xlane.f32.xlu1 %v349_v11 }
 0x218   :  { %v1798_v12 = vpop.eup %1797  ;;  %v455_v16 = vpop.permute.xlu2 %454 }
 0x219   :  { %v232_v14 = vmul.f32 %v1798_v12, %v1794_v48  ;;  %v342_v15 = vpop.xlane.xlu0 %341  ;;  %v460_v21 = vsel %vm171_vm1, %v455_v16, 0 }
 0x21a   :  { %v344_v17 = vsub.f32 %v336_v51, %v342_v15 }
 0x21b   :  { %v234_v19 = vpack.c.bf16 %v232_v14, %v232_v14 }
 0x21c   :  { %v347_v20 = vmul.f32 1.442695, %v344_v17 }
 0x21d   :  { %1674 = vmatmul.msk.bf16.vlgmr.msrb.gmra.mxu1 %vm171_vm1, %v234_v19 }
 0x21e   :  { %1799 = vpow2.f32 %v347_v20  ;;  %469 = vmatpush.bf16.xpose.msrb.mxu1 %v460_v21 }
 0x220   :  { %v453_v28 = vpop.permute.xlu2 %452 }
 0x224   :  { %v1800_v23 = vpop.eup %1799 }
 0x225   :  { %v352_v27 = vsel %vm171_vm1, %v1800_v23, 0.0 }
 0x226   :  { %353 = vadd.xlane.f32.xlu0 %v352_v27 }
 0x23a   :  { %477 = vrot.lane.b32.xlu0 %v2063_v22, %s1927_s3 }
 0x259   :  { %v217_v29 = vpop.xlane.xlu2 %216 }
 0x25a   :  { %v219_v30 = vsub.f32 %v211_v56, %v217_v29 }
 0x25c   :  { %v222_v31 = vmul.f32 1.442695, %v219_v30 }
 0x25e   :  { %1801 = vpow2.f32 %v222_v31 }
 0x264   :  { %v1802_v32 = vpop.eup %1801 }
 0x265   :  { %v227_v33 = vsel %vm171_vm1, %v1802_v32, 0.0 }
 0x266   :  { %228 = vadd.xlane.f32.xlu1 %v227_v33 }
 0x27f   :  { %388 = vrot.lane.b32.xlu1 %v2114_v35, %s1926_s0 }
 0x287   :  { %475 = vrot.lane.b32.xlu1 %v2070_v24, %s1927_s3 }
 0x288   :  { %v351_v36 = vpop.xlane.xlu1 %350 }
 0x289   :  { %1803 = vrcp.f32 %v351_v36 }
 0x28f   :  { %v1804_v37 = vpop.eup %1803  ;;  %524 = vrot.lane.b32.xlu1 %v2095_v55, %s1927_s3 }
 0x290   :  { %v357_v38 = vmul.f32 %v1804_v37, %v1796_v10 }
 0x292   :  { %v359_v39 = vpack.c.bf16 %v357_v38, %v357_v38 }
 0x294   :  { %1678 = vmatmul.msk.bf16.vlgmr.msra.gmra.mxu1 %vm171_vm1, %v359_v39 }
 0x297   :  { %616 = vrot.lane.b32.xlu1 %v2063_v22, %s1928_s23  ;;  %v2134_v22 = vsel %vm239_vm2, %v1680_v45, 0 }
 0x298   :  { %425 = vmatpush.bf16.msra.mxu3 %v2134_v22 }
 0x29a   :  { %v252_v40 = vpop.f32.mrf.mxu1 }
 0x29f   :  { %591 = vrot.lane.b32.xlu1 %v2059_v18, %s1928_s23  ;;  %v354_v18 = vpop.xlane.xlu0 %353 }
 0x2a2   :  { %v254_v41 = vpop.f32.mrf.mxu1 }
 0x2a4   :  { %1683 = vmatmul.msk.bf16.vlgmr.msrb.gmra.mxu1 %vm171_vm1, %v453_v28 }
 0x2a7   :  { %614 = vrot.lane.b32.xlu1 %v2070_v24, %s1928_s23 }
 0x2ac   :  { %v478_v48 = vpop.permute.xlu0 %477 }
 0x2ad   :  { %v483_v51 = vsel %vm171_vm1, %v478_v48, 0 }
 0x2d9   :  { %v229_v42 = vpop.xlane.xlu1 %228 }
 0x2da   :  { %1805 = vrcp.f32 %v229_v42 }
 0x2db   :  { %1807 = vrcp.f32 %v354_v18 }
 0x2e0   :  { %v1806_v43 = vpop.eup %1805 }
 0x2e1   :  { %v233_v44 = vmul.f32 %v1806_v43, %v1802_v32  ;;  %v1808_v47 = vpop.eup %1807 }
 0x2e2   :  { %v358_v24 = vmul.f32 %v1808_v47, %v1800_v23 }
 0x2e3   :  { %v235_v46 = vpack.c.bf16 %v233_v44, %v233_v44 }
 0x2e4   :  { %v360_v52 = vpack.c.bf16 %v358_v24, %v358_v24 }
 0x2e5   :  { %1675 = vmatmul.msk.bf16.vlgmr.msrb.gmra.mxu2 %vm171_vm1, %v235_v46 }
 0x2f1   :  { %v389_v49 = vpop.permute.xlu1 %388 }
 0x2f2   :  { %v394_v50 = vsel %vm239_vm2, %v389_v49, 0 }
 0x2f3   :  { %403 = vmatpush.bf16.msra.mxu2 %v394_v50 }
 0x2f6   :  { %1679 = vmatmul.msk.bf16.vlgmr.msra.gmra.mxu2 %vm171_vm1, %v360_v52 }
 0x2f7   :  { %492 = vmatpush.bf16.xpose.msrb.mxu2 %v483_v51 }
 0x2f9   :  { %v476_v53 = vpop.permute.xlu1 %475 }
 0x301   :  { %v525_v54 = vpop.permute.xlu1 %524 }
 0x302   :  { %v530_v56 = vsel %vm239_vm2, %v525_v54, 0 }
 0x303   :  { %539 = vmatpush.bf16.msrb.mxu3 %v530_v56 }
 0x306   :  { %1684 = vmatmul.msk.bf16.vlgmr.msrb.gmra.mxu2 %vm171_vm1, %v476_v53 }
 0x309   :  { %v617_v10 = vpop.permute.xlu1 %616 }
 0x30a   :  { %v622_v14 = vsel %vm171_vm1, %v617_v10, 0 }
 0x311   :  { %v381_v57 = vpop.f32.mrf.mxu1 }
 0x319   :  { %v383_v58 = vpop.f32.mrf.mxu1 }
 0x321   :  { %v471_v59 = vpop.f32.mrf.mxu1 }
 0x322   :  { %v498_v60 = vmul.f32 0.35355338, %v471_v59 }
 0x324   :  { %v500_v61 = vsel %vm171_vm1, %v498_v60, -inf }
 0x325   :  { %501 = vmax.xlane.f32.xlu0 %v500_v61 }
 0x329   :  { %v473_v62 = vpop.f32.mrf.mxu1 }
 0x339   :  { %545 = vrot.lane.b32.xlu0 %v2114_v35, %s1927_s3 }
 0x368   :  { %v271_v7 = vpop.f32.mrf.mxu2 }
 0x369   :  { %v275_v8 = vpack.c.bf16 %v271_v7, %v252_v40 }
 0x36b   :  { %1682 = vmatmul.msk.bf16.vlgmr.msrb.gmra.mxu0 %vm171_vm1, %v275_v8 }
 0x370   :  { %v273_v9 = vpop.f32.mrf.mxu2 }
 0x379   :  { %v405_v11 = vpop.f32.mrf.mxu2 }
 0x37a   :  { %v409_v12 = vpack.c.bf16 %v405_v11, %v381_v57 }
 0x37c   :  { %1681 = vmatmul.msk.bf16.vlgmr.msra.gmra.mxu3 %vm171_vm1, %v409_v12 }
 0x37d   :  { %631 = vmatpush.bf16.xpose.msra.mxu3 %v622_v14  ;;  %v1687_v14 = vld [vmem:[%s2407_s4 + $0x8] sm:$0xf] }
 0x381   :  { %v407_v15 = vpop.f32.mrf.mxu2 }
 0x382   :  { %v2181_v15 = vsel %vm239_vm2, %v1687_v14, 0 }
 0x383   :  { %582 = vmatpush.bf16.msra.mxu1 %v2181_v15 }
 0x389   :  { %v494_v16 = vpop.f32.mrf.mxu2 }
 0x38a   :  { %v499_v30 = vmul.f32 0.35355338, %v494_v16 }
 0x38c   :  { %v503_v31 = vsel %vm171_vm1, %v499_v30, -inf }
 0x391   :  { %v496_v17 = vpop.f32.mrf.mxu2 }
 0x398   :  { %v502_v19 = vpop.xlane.xlu0 %501 }
 0x399   :  { %v506_v20 = vsub.f32 %v498_v60, %v502_v19 }
 0x39b   :  { %v508_v21 = vmul.f32 1.442695, %v506_v20 }
 0x39d   :  { %1809 = vpow2.f32 %v508_v21 }
 0x3a3   :  { %v1810_v23 = vpop.eup %1809 }
 0x3a4   :  { %v512_v27 = vsel %vm171_vm1, %v1810_v23, 0.0 }
 0x3a5   :  { %513 = vadd.xlane.f32.xlu2 %v512_v27 }
 0x3ab   :  { %v546_v28 = vpop.permute.xlu0 %545 }
 0x3ac   :  { %v551_v29 = vsel %vm239_vm2, %v546_v28, 0 }
 0x3ad   :  { %560 = vmatpush.bf16.msra.mxu0 %v551_v29 }
 0x3bd   :  { %593 = vrot.lane.b32.xlu2 %v2055_v13, %s1928_s23  ;;  %v592_v13 = vpop.permute.xlu1 %591 }
 0x3c5   :  { %v615_v42 = vpop.permute.xlu1 %614 }
 0x3e6   :  { %504 = vmax.xlane.f32.xlu2 %v503_v31 }
 0x3e8   :  { %v447_v32 = vpop.f32.mrf.mxu0 }
 0x3f0   :  { %v449_v16 = vpop.f32.mrf.mxu0 }
 0x3ff   :  { %v427_v33 = vpop.f32.mrf.mxu3 }
 0x400   :  { %v2161_v34 = vadd.f32 %v447_v32, %v427_v33 }
 0x407   :  { %v2170_v47 = vpop.f32.mrf.mxu3 }
 0x418   :  { %v514_v36 = vpop.xlane.xlu2 %513 }
 0x419   :  { %1811 = vrcp.f32 %v514_v36 }
 0x41f   :  { %v1812_v37 = vpop.eup %1811 }
 0x420   :  { %v520_v38 = vmul.f32 %v1812_v37, %v1810_v23  ;;  %v594_v39 = vpop.permute.xlu2 %593 }
 0x421   :  { %v599_v40 = vsel %vm171_vm1, %v594_v39, 0 }
 0x422   :  { %v522_v41 = vpack.c.bf16 %v520_v38, %v520_v38  ;;  %608 = vmatpush.bf16.xpose.msra.mxu2 %v599_v40 }
 0x424   :  { %1685 = vmatmul.msk.bf16.vlgmr.msrb.gmra.mxu3 %vm171_vm1, %v522_v41 }
 0x425   :  { %805 = vmatpush.bf16.msrb.mxu3 %v2019_v0 }
 0x429   :  { %1689 = vmatmul.msk.bf16.vlgmr.msra.gmra.mxu2 %vm171_vm1, %v592_v13  ;;  %806 = vmatpush.bf16.msrb.mxu3 %v2029_v2 }
 0x434   :  { %1690 = vmatmul.msk.bf16.vlgmr.msra.gmra.mxu3 %vm171_vm1, %v615_v42 }
 0x459   :  { %v505_v43 = vpop.xlane.xlu2 %504 }
 0x45a   :  { %v507_v44 = vsub.f32 %v499_v30, %v505_v43 }
 0x45c   :  { %v510_v45 = vmul.f32 1.442695, %v507_v44  ;;  %v450_v44 = vadd.f32 %v449_v16, %v2170_v47 }
 0x45e   :  { %1813 = vpow2.f32 %v510_v45 }
 0x464   :  { %v1814_v46 = vpop.eup %1813 }
 0x465   :  { %v515_v18 = vsel %vm171_vm1, %v1814_v46, 0.0 }
 0x466   :  { %516 = vadd.xlane.f32.xlu1 %v515_v18 }
 0x4a7   :  { %v541_v24 = vpop.f32.mrf.mxu3 }
 0x4ac   :  { %v610_v0 = vpop.f32.mrf.mxu2 }
 0x4ad   :  { %v637_v48 = vmul.f32 0.35355338, %v610_v0 }
 0x4af   :  { %v543_v49 = vpop.f32.mrf.mxu3  ;;  %v639_v50 = vsel %vm171_vm1, %v637_v48, -inf }
 0x4b0   :  { %640 = vmax.xlane.f32.xlu0 %v639_v50  ;;  %v1929_v49 = vmov 32.0  }
 0x4b4   :  { %v612_v2 = vpop.f32.mrf.mxu2 }
 0x4b7   :  { %v633_v51 = vpop.f32.mrf.mxu3 }
 0x4b8   :  { %v638_v52 = vmul.f32 0.35355338, %v633_v51 }
 0x4ba   :  { %v642_v53 = vsel %vm171_vm1, %v638_v52, -inf }
 0x4bb   :  { %643 = vmax.xlane.f32.xlu2 %v642_v53 }
 0x4bf   :  { %v635_v54 = vpop.f32.mrf.mxu3 }
 0x4d9   :  { %v517_v56 = vpop.xlane.xlu1 %516 }
 0x4da   :  { %1815 = vrcp.f32 %v517_v56 }
 0x4e0   :  { %v1816_v57 = vpop.eup %1815 }
 0x4e1   :  { %v521_v58 = vmul.f32 %v1816_v57, %v1814_v46 }
 0x4e3   :  { %v523_v59 = vpack.c.bf16 %v521_v58, %v521_v58 }
 0x4e5   :  { %1686 = vmatmul.msk.bf16.vlgmr.msra.gmra.mxu0 %vm171_vm1, %v523_v59 }
 0x523   :  { %v641_v60 = vpop.xlane.xlu0 %640 }
 0x524   :  { %v645_v61 = vsub.f32 %v637_v48, %v641_v60 }
 0x526   :  { %v647_v62 = vmul.f32 1.442695, %v645_v61 }
 0x528   :  { %1817 = vpow2.f32 %v647_v62 }
 0x52e   :  { %v1818_v63 = vpop.eup %1817  ;;  %v644_v7 = vpop.xlane.xlu2 %643 }
 0x52f   :  { %v646_v8 = vsub.f32 %v638_v52, %v644_v7  ;;  %v651_v9 = vsel %vm171_vm1, %v1818_v63, 0.0 }
 0x530   :  { %652 = vadd.xlane.f32.xlu1 %v651_v9 }
 0x531   :  { %v649_v10 = vmul.f32 1.442695, %v646_v8 }
 0x533   :  { %1819 = vpow2.f32 %v649_v10 }
 0x539   :  { %v1820_v11 = vpop.eup %1819 }
 0x53a   :  { %v654_v12 = vsel %vm171_vm1, %v1820_v11, 0.0 }
 0x53b   :  { %655 = vadd.xlane.f32.xlu2 %v654_v12 }
 0x549   :  { %663 = vrot.lane.b32.xlu1 %v2095_v55, %s1928_s23 }
 0x553   :  { %684 = vrot.lane.b32.xlu2 %v2114_v35, %s1928_s23 }
 0x562   :  { %v562_v17 = vpop.f32.mrf.mxu0 }
 0x563   :  { %v566_v19 = vpack.c.bf16 %v562_v17, %v541_v24 }
 0x565   :  { %1688 = vmatmul.msk.bf16.vlgmr.msra.gmra.mxu1 %vm171_vm1, %v566_v19 }
 0x56a   :  { %v564_v20 = vpop.f32.mrf.mxu0 }
 0x5a3   :  { %v653_v21 = vpop.xlane.xlu1 %652 }
 0x5ae   :  { %v656_v23 = vpop.xlane.xlu2 %655 }
 0x5af   :  { %1821 = vrcp.f32 %v656_v23 }
 0x5b0   :  { %1823 = vrcp.f32 %v653_v21 }
 0x5b1   :  { %1825 = vrcp.f32 %v1929_v49 }
 0x5b5   :  { %v1822_v27 = vpop.eup %1821 }
 0x5b6   :  { %v660_v28 = vmul.f32 %v1822_v27, %v1820_v11  ;;  %v685_v29 = vpop.permute.xlu2 %684  ;;  %v1824_v30 = vpop.eup %1823 }
 0x5b7   :  { %v690_v31 = vsel %vm239_vm2, %v685_v29, 0  ;;  %v659_v35 = vmul.f32 %v1824_v30, %v1818_v63  ;;  %v1826_v50 = vpop.eup %1825 }
 0x5b8   :  { %v662_v55 = vpack.c.bf16 %v660_v28, %v660_v28  ;;  %699 = vmatpush.bf16.msrb.mxu1 %v690_v31  ;;  %v741_v2 = vmul.f32 32.0, %v1826_v50  ;;  %vm745_vm3 = vweird.f32 %v1826_v50  ;;  %v1785_v31 = vld [vmem:[%s2408_s5] ss:$0 sm:$0xff] }
 0x5b9   :  { %v661_v36 = vpack.c.bf16 %v659_v35, %v659_v35 }
 0x5ba   :  { %v742_v51 = vsub.f32 1.0, %v741_v2 }
 0x5bb   :  { %v664_v32 = vpop.permute.xlu1 %663  ;;  %1692 = vmatmul.msk.bf16.vlgmr.msrb.gmra.mxu1 %vm171_vm1, %v662_v55 }
 0x5bc   :  { %833 = vmatpush.bf16.msra.mxu1 %v2077_v25  ;;  %v669_v33 = vsel %vm239_vm2, %v664_v32, 0  ;;  %v1693_v25 = vld [vmem:[%s2407_s4 + $0xc] sm:$0xf]  ;;  %v743_v52 = vmul.f32 %v1826_v50, %v742_v51 }
 0x5bd   :  { %678 = vmatpush.bf16.msrb.mxu0 %v669_v33  ;;  %v2202_v39 = vsel %vm239_vm2, %v1693_v25, 0  ;;  %v1786_v33 = vld [vmem:[%s2409_s6] ss:$0 sm:$0xff] }
 0x5be   :  { %721 = vmatpush.bf16.msrb.mxu2 %v2202_v39 }
 0x5c0   :  { %834 = vmatpush.bf16.msra.mxu1 %v2083_v26  ;;  %1691 = vmatmul.msk.bf16.vlgmr.msrb.gmra.mxu0 %vm171_vm1, %v661_v36 }
 0x5c1   :  { %819 = vmatpush.bf16.msra.mxu0 %v2024_v1 }
 0x5c5   :  { %820 = vmatpush.bf16.msra.mxu0 %v2034_v3 }
 0x5e2   :  { %v584_v37 = vpop.f32.mrf.mxu1 }
 0x5e3   :  { %v589_v38 = vadd.f32 %v584_v37, %v2161_v34 }
 0x5ea   :  { %v586_v26 = vpop.f32.mrf.mxu1 }
 0x5eb   :  { %v590_v46 = vadd.f32 %v586_v26, %v450_v44 }
 0x638   :  { %v701_v40 = vpop.f32.mrf.mxu1 }
 0x63d   :  { %v680_v41 = vpop.f32.mrf.mxu0 }
 0x63e   :  { %v705_v1 = vpack.c.bf16 %v701_v40, %v680_v41 }
 0x640   :  { %v703_v13 = vpop.f32.mrf.mxu1  ;;  %1694 = vmatmul.msk.bf16.vlgmr.msrb.gmra.mxu2 %vm171_vm1, %v705_v1 }
 0x645   :  { %v682_v3 = vpop.f32.mrf.mxu0 }
 0x6c3   :  { %v723_v42 = vpop.f32.mrf.mxu2 }
 0x6c4   :  { %v728_v43 = vadd.f32 %v723_v42, %v589_v38 }
 0x6c6   :  { %v730_v34 = vadd.f32 %v728_v43, %v2039_v4  ;;  %v744_v4 = vadd.f32 %v1826_v50, %v743_v52 }
 0x6c8   :  { %v734_v45 = vsel %vm87_vm0, %v730_v34, 0.0  ;;  %v2211_v47 = vsel %vm745_vm3, %v1826_v50, %v744_v4 }
 0x6c9   :  { %735 = vadd.xlane.f32.xlu0 %v734_v45 }
 0x6cb   :  { %v725_v18 = vpop.f32.mrf.mxu2 }
 0x6cc   :  { %v729_v24 = vadd.f32 %v725_v18, %v590_v46 }
 0x6ce   :  { %v731_v0 = vadd.f32 %v729_v24, %v2044_v5 }
 0x6d0   :  { %v737_v48 = vsel %vm87_vm0, %v731_v0, 0.0 }
 0x6d1   :  { %738 = vadd.xlane.f32.xlu0 %v737_v48 }
 0x73c   :  { %v736_v53 = vpop.xlane.xlu0 %735 }
 0x73d   :  { %v747_v54 = vmul.f32 %v2211_v47, %v736_v53 }
 0x73f   :  { %v749_v56 = vsub.f32 %v730_v34, %v747_v54 }
 0x741   :  { %v751_v57 = vmul.f32 %v749_v56, %v749_v56 }
 0x743   :  { %v753_v5 = vsel %vm87_vm0, %v751_v57, 0.0 }
 0x744   :  { %754 = vadd.xlane.f32.xlu1 %v753_v5  ;;  %v739_v58 = vpop.xlane.xlu0 %738 }
 0x745   :  { %v748_v59 = vmul.f32 %v2211_v47, %v739_v58 }
 0x747   :  { %v750_v60 = vsub.f32 %v731_v0, %v748_v59 }
 0x749   :  { %v752_v61 = vmul.f32 %v750_v60, %v750_v60 }
 0x74b   :  { %v756_v62 = vsel %vm87_vm0, %v752_v61, 0.0 }
 0x74c   :  { %757 = vadd.xlane.f32.xlu2 %v756_v62 }
 0x7b7   :  { %v755_v63 = vpop.xlane.xlu1 %754 }
 0x7b8   :  { %v759_v7 = vmul.f32 %v755_v63, %v2211_v47 }
 0x7ba   :  { %v761_v8 = vadd.f32 1e-05, %v759_v7 }
 0x7bc   :  { %1827 = vrsqrt.f32 %v761_v8  ;;  %vm769_vm5 = vweird.f32 %v761_v8 }
 0x7bf   :  { %v758_v9 = vpop.xlane.xlu2 %757 }
 0x7c0   :  { %v760_v10 = vmul.f32 %v758_v9, %v2211_v47 }
 0x7c2   :  { %v1828_v11 = vpop.eup %1827  ;;  %v762_v12 = vadd.f32 1e-05, %v760_v10 }
 0x7c3   :  { %v764_v14 = vmul.f32 %v1828_v11, %v761_v8  ;;  %vm770_vm4 = vweird.f32 %v1828_v11 }
 0x7c4   :  { %1829 = vrsqrt.f32 %v762_v12  ;;  %vm771_vm6 = vmor %vm769_vm5, %vm770_vm4  ;;  %vm779_vm8 = vweird.f32 %v762_v12 }
 0x7c5   :  { %v765_v16 = vmul.f32 %v1828_v11, %v764_v14 }
 0x7c7   :  { %v766_v17 = vmul.f32 0.5, %v765_v16 }
 0x7c9   :  { %v767_v19 = vsub.f32 1.5, %v766_v17 }
 0x7ca   :  { %v1830_v20 = vpop.eup %1829 }
 0x7cb   :  { %v768_v21 = vmul.f32 %v1828_v11, %v767_v19  ;;  %v774_v23 = vmul.f32 %v1830_v20, %v762_v12  ;;  %vm780_vm7 = vweird.f32 %v1830_v20 }
 0x7cc   :  { %vm781_vm9 = vmor %vm779_vm8, %vm780_vm7 }
 0x7cd   :  { %v775_v27 = vmul.f32 %v1830_v20, %v774_v23  ;;  %v772_v28 = vsel %vm771_vm6, %v1828_v11, %v768_v21 }
 0x7ce   :  { %v783_v55 = vmul.f32 %v772_v28, %v749_v56 }
 0x7cf   :  { %v776_v29 = vmul.f32 0.5, %v775_v27 }
 0x7d0   :  { %v788_v36 = vmul.f32 %v1785_v31, %v783_v55 }
 0x7d1   :  { %v777_v30 = vsub.f32 1.5, %v776_v29 }
 0x7d2   :  { %v2225_v25 = vadd.f32 %v1786_v33, %v788_v36 }
 0x7d3   :  { %v778_v35 = vmul.f32 %v1830_v20, %v777_v30 }
 0x7d5   :  { %v782_v32 = vsel %vm781_vm9, %v1830_v20, %v778_v35 }
 0x7d6   :  { %v784_v37 = vmul.f32 %v782_v32, %v750_v60 }
 0x7d8   :  { %v789_v38 = vmul.f32 %v1785_v31, %v784_v37 }
 0x7da   :  { %v2227_v26 = vadd.f32 %v1786_v33, %v789_v38 }
 0x7dc   :  { %v795_v40 = vpack.c.bf16 %v2227_v26, %v2225_v25 }
 0x7de   :  { %1695 = vmatmul.msk.bf16.vlgmr.msrb.gmra.mxu3 %vm87_vm0, %v795_v40  ;;  %1696 = vmatmul.msk.bf16.vlgmr.msra.gmra.mxu0 %vm87_vm0, %v795_v40 }
 0x7df   :  { %1697 = vmatmul.msk.bf16.vlgmr.msra.gmra.mxu1 %vm87_vm0, %v795_v40 }
 0x85b   :  { %v822_v41 = vpop.f32.mrf.mxu0 }
 0x85c   :  { %v843_v1 = vpack.c.bf16 %v822_v41, %v822_v41  ;;  %v836_v13 = vpop.f32.mrf.mxu1 }
 0x85d   :  { %v845_v3 = vpack.c.bf16 %v836_v13, %v836_v13 }
 0x85e   :  { %v851_v42 = vsel %vm171_vm1, %v843_v1, 0  ;;  %v956_v43 = vunpack.c.l.b16 %v843_v1 }
 0x85f   :  { %v915_v34 = vsel %vm239_vm2, %v845_v3, 0  ;;  %860 = vmatpush.bf16.xpose.msra.mxu2 %v851_v42  ;;  %v1035_v5 = vunpack.c.l.b16 %v845_v3 }
 0x860   :  { %v2236_v44 = vpack.c.b16 %v956_v43, %v956_v43  ;;  %924 = vmatpush.bf16.msrb.mxu0 %v915_v34 }
 0x861   :  { %v808_v45 = vpop.f32.mrf.mxu3  ;;  %v2256_v58 = vpack.c.b16 %v1035_v5, %v1035_v5 }
 0x862   :  { %v841_v46 = vpack.c.bf16 %v808_v45, %v808_v45  ;;  %958 = vrot.lane.b32.xlu0 %v2236_v44, %s1926_s0 }
 0x863   :  { %v824_v18 = vpop.f32.mrf.mxu0 }
 0x864   :  { %v951_v24 = vunpack.c.l.b16 %v841_v46  ;;  %v844_v0 = vpack.c.bf16 %v824_v18, %v824_v18  ;;  %v838_v48 = vpop.f32.mrf.mxu1 }
 0x865   :  { %v2240_v49 = vpack.c.bf16 %v838_v48, %v838_v48 }
 0x866   :  { %v870_v50 = vsel %vm171_vm1, %v844_v0, 0  ;;  %1698 = vmatmul.msk.bf16.vlgmr.msra.gmra.mxu2 %vm171_vm1, %v841_v46  ;;  %v952_v51 = vpack.c.b16 %v951_v24, %v951_v24  ;;  %v985_v53 = vunpack.c.l.b16 %v844_v0 }
 0x867   :  { %v934_v2 = vsel %vm239_vm2, %v2240_v49, 0  ;;  %879 = vmatpush.bf16.xpose.msra.mxu3 %v870_v50  ;;  %v1059_v36 = vunpack.c.l.b16 %v2240_v49 }
 0x868   :  { %943 = vmatpush.bf16.msrb.mxu1 %v934_v2  ;;  %v2250_v57 = vpack.c.b16 %v985_v53, %v985_v53 }
 0x869   :  { %v810_v52 = vpop.f32.mrf.mxu3  ;;  %v2281_v37 = vpack.c.b16 %v1059_v36, %v1059_v36 }
 0x86a   :  { %v842_v4 = vpack.c.bf16 %v810_v52, %v810_v52  ;;  %953 = vrot.lane.b32.xlu0 %v952_v51, %s1926_s0 }
 0x86c   :  { %v980_v54 = vunpack.c.l.b16 %v842_v4 }
 0x86e   :  { %v2247_v56 = vpack.c.b16 %v980_v54, %v980_v54  ;;  %1699 = vmatmul.msk.bf16.vlgmr.msra.gmra.mxu3 %vm171_vm1, %v842_v4 }
 0x870   :  { %982 = vrot.lane.b32.xlu1 %v2247_v56, %s1926_s0 }
 0x872   :  { %987 = vrot.lane.b32.xlu0 %v2250_v57, %s1926_s0 }
 0x878   :  { %1037 = vrot.lane.b32.xlu1 %v2256_v58, %s1926_s0 }
 0x880   :  { %1117 = vrot.lane.b32.xlu1 %v952_v51, %s1927_s3 }
 0x8d4   :  { %v959_v59 = vpop.permute.xlu0 %958 }
 0x8d5   :  { %v964_v60 = vsel %vm171_vm1, %v959_v59, 0 }
 0x8d6   :  { %973 = vmatpush.bf16.xpose.msrb.mxu2 %v964_v60 }
 0x8dc   :  { %v954_v61 = vpop.permute.xlu0 %953 }
 0x8dd   :  { %1702 = vmatmul.msk.bf16.vlgmr.msrb.gmra.mxu2 %vm171_vm1, %v954_v61 }
 0x8de   :  { %1093 = vmatpush.bf16.msra.mxu2 %v2134_v22 }
 0x8e2   :  { %v983_v62 = vpop.permute.xlu1 %982 }
 0x8e4   :  { %v988_v63 = vpop.permute.xlu0 %987 }
 0x8e5   :  { %v993_v7 = vsel %vm171_vm1, %v988_v63, 0 }
 0x8e6   :  { %1002 = vmatpush.bf16.xpose.msrb.mxu3 %v993_v7 }
 0x8e9   :  { %v862_v8 = vpop.f32.mrf.mxu2 }
 0x8ea   :  { %v885_v9 = vmul.f32 0.35355338, %v862_v8  ;;  %v1038_v10 = vpop.permute.xlu1 %1037 }
 0x8eb   :  { %v1043_v11 = vsel %vm239_vm2, %v1038_v10, 0 }
 0x8ec   :  { %1052 = vmatpush.bf16.msra.mxu0 %v1043_v11  ;;  %v887_v12 = vsel %vm171_vm1, %v885_v9, -inf }
 0x8ed   :  { %888 = vmax.xlane.f32.xlu0 %v887_v12  ;;  %1703 = vmatmul.msk.bf16.vlgmr.msrb.gmra.mxu3 %vm171_vm1, %v983_v62 }
 0x8ee   :  { %1110 = vmatpush.bf16.msra.mxu3 %v2150_v6 }
 0x8f1   :  { %v864_v22 = vpop.f32.mrf.mxu2  ;;  %v881_v14 = vpop.f32.mrf.mxu3 }
 0x8f2   :  { %v886_v16 = vmul.f32 0.35355338, %v881_v14  ;;  %v1118_v50 = vpop.permute.xlu1 %1117 }
 0x8f4   :  { %v890_v17 = vsel %vm171_vm1, %v886_v16, -inf }
 0x8f5   :  { %891 = vmax.xlane.f32.xlu1 %v890_v17 }
 0x8f9   :  { %v883_v19 = vpop.f32.mrf.mxu3 }
 0x90e   :  { %1140 = vrot.lane.b32.xlu1 %v2247_v56, %s1927_s3 }
 0x916   :  { %1253 = vrot.lane.b32.xlu1 %v2236_v44, %s1928_s23 }
 0x91e   :  { %1276 = vrot.lane.b32.xlu1 %v2250_v57, %s1928_s23 }
 0x926   :  { %1251 = vrot.lane.b32.xlu1 %v952_v51, %s1928_s23 }
 0x960   :  { %v889_v6 = vpop.xlane.xlu0 %888  ;;  %v975_v20 = vpop.f32.mrf.mxu2 }
 0x961   :  { %v893_v21 = vsub.f32 %v885_v9, %v889_v6  ;;  %v1008_v23 = vmul.f32 0.35355338, %v975_v20 }
 0x963   :  { %v895_v27 = vmul.f32 1.442695, %v893_v21  ;;  %v1010_v28 = vsel %vm171_vm1, %v1008_v23, -inf }
 0x964   :  { %1011 = vmax.xlane.f32.xlu2 %v1010_v28 }
 0x965   :  { %1831 = vpow2.f32 %v895_v27 }
 0x968   :  { %v977_v29 = vpop.f32.mrf.mxu2  ;;  %v892_v2 = vpop.xlane.xlu1 %891 }
 0x969   :  { %v894_v51 = vsub.f32 %v886_v16, %v892_v2 }
 0x96b   :  { %v1832_v30 = vpop.eup %1831  ;;  %v897_v52 = vmul.f32 1.442695, %v894_v51 }
 0x96c   :  { %v899_v31 = vsel %vm171_vm1, %v1832_v30, 0.0 }
 0x96d   :  { %900 = vadd.xlane.f32.xlu2 %v899_v31 }
 0x970   :  { %v1004_v55 = vpop.f32.mrf.mxu3 }
 0x971   :  { %v1009_v35 = vmul.f32 0.35355338, %v1004_v55 }
 0x973   :  { %v1013_v32 = vsel %vm171_vm1, %v1009_v35, -inf }
 0x974   :  { %1014 = vmax.xlane.f32.xlu0 %v1013_v32 }
 0x978   :  { %v1006_v33 = vpop.f32.mrf.mxu3 }
 0x988   :  { %1061 = vrot.lane.b32.xlu0 %v2281_v37, %s1926_s0  ;;  %s1932_s0 = smov 8  }
 0x9d7   :  { %v1012_v38 = vpop.xlane.xlu2 %1011 }
 0x9d8   :  { %v1016_v40 = vsub.f32 %v1008_v23, %v1012_v38 }
 0x9da   :  { %v1018_v41 = vmul.f32 1.442695, %v1016_v40 }
 0x9dc   :  { %1833 = vpow2.f32 %v1018_v41 }
 0x9e0   :  { %v901_v1 = vpop.xlane.xlu2 %900 }
 0x9e1   :  { %1835 = vrcp.f32 %v901_v1 }
 0x9e2   :  { %v1834_v13 = vpop.eup %1833 }
 0x9e3   :  { %v1022_v3 = vsel %vm171_vm1, %v1834_v13, 0.0 }
 0x9e4   :  { %1023 = vadd.xlane.f32.xlu2 %v1022_v3 }
 0x9e7   :  { %v1836_v42 = vpop.eup %1835  ;;  %v1015_v43 = vpop.xlane.xlu0 %1014 }
 0x9e8   :  { %v907_v34 = vmul.f32 %v1836_v42, %v1832_v30  ;;  %v1017_v45 = vsub.f32 %v1009_v35, %v1015_v43 }
 0x9ea   :  { %v909_v46 = vpack.c.bf16 %v907_v34, %v907_v34  ;;  %v1020_v18 = vmul.f32 1.442695, %v1017_v45 }
 0x9ec   :  { %1837 = vpow2.f32 %v1020_v18  ;;  %1700 = vmatmul.msk.bf16.vlgmr.msrb.gmra.mxu0 %vm171_vm1, %v909_v46 }
 0x9ed   :  { %1839 = vpow2.f32 %v897_v52 }
 0x9f2   :  { %v1838_v24 = vpop.eup %1837 }
 0x9f3   :  { %v1025_v0 = vsel %vm171_vm1, %v1838_v24, 0.0  ;;  %v1840_v4 = vpop.eup %1839 }
 0x9f4   :  { %1026 = vadd.xlane.f32.xlu0 %v1025_v0  ;;  %v902_v53 = vsel %vm171_vm1, %v1840_v4, 0.0 }
 0x9fa   :  { %v1062_v48 = vpop.permute.xlu0 %1061 }
 0x9fb   :  { %v1067_v49 = vsel %vm239_vm2, %v1062_v48, 0 }
 0x9fc   :  { %1119 = vrot.lane.b32.xlu2 %v2236_v44, %s1927_s3  ;;  %1076 = vmatpush.bf16.msra.mxu1 %v1067_v49 }
 0xa08   :  { %1142 = vrot.lane.b32.xlu0 %v2250_v57, %s1927_s3 }
 0xa25   :  { %903 = vadd.xlane.f32.xlu2 %v902_v53 }
 0xa3d   :  { %1189 = vrot.lane.b32.xlu2 %v2256_v58, %s1927_s3 }
 0xa57   :  { %v1024_v54 = vpop.xlane.xlu2 %1023 }
 0xa58   :  { %1841 = vrcp.f32 %v1024_v54 }
 0xa5e   :  { %v1842_v5 = vpop.eup %1841 }
 0xa5f   :  { %v1030_v44 = vmul.f32 %v1842_v5, %v1834_v13  ;;  %v1120_v59 = vpop.permute.xlu2 %1119 }
 0xa60   :  { %v1125_v60 = vsel %vm171_vm1, %v1120_v59, 0 }
 0xa61   :  { %v1032_v61 = vpack.c.bf16 %v1030_v44, %v1030_v44  ;;  %1134 = vmatpush.bf16.xpose.msrb.mxu0 %v1125_v60 }
 0xa63   :  { %1704 = vmatmul.msk.bf16.vlgmr.msra.gmra.mxu0 %vm171_vm1, %v1032_v61 }
 0xa67   :  { %v1027_v7 = vpop.xlane.xlu0 %1026 }
 0xa69   :  { %1242 = vmatpush.bf16.msra.mxu0 %v2181_v15  ;;  %v926_v57 = vpop.f32.mrf.mxu0  ;;  %v1141_v15 = vpop.permute.xlu1 %1140 }
 0xa71   :  { %v928_v62 = vpop.f32.mrf.mxu0  ;;  %v1254_v19 = vpop.permute.xlu1 %1253 }
 0xa72   :  { %v1259_v20 = vsel %vm171_vm1, %v1254_v19, 0 }
 0xa73   :  { %1708 = vmatmul.msk.bf16.vlgmr.msrb.gmra.mxu0 %vm171_vm1, %v1118_v50 }
 0xa79   :  { %v1277_v21 = vpop.permute.xlu1 %1276 }
 0xa7a   :  { %v1143_v11 = vpop.permute.xlu0 %1142 }
 0xa7b   :  { %v1148_v14 = vsel %vm171_vm1, %v1143_v11, 0 }
 0xa81   :  { %v1252_v23 = vpop.permute.xlu1 %1251 }
 0xa98   :  { %v904_v63 = vpop.xlane.xlu2 %903 }
 0xa99   :  { %1843 = vrcp.f32 %v904_v63 }
 0xa9a   :  { %1845 = vrcp.f32 %v1027_v7 }
 0xa9f   :  { %v1844_v8 = vpop.eup %1843 }
 0xaa0   :  { %v908_v9 = vmul.f32 %v1844_v8, %v1840_v4  ;;  %v1190_v10 = vpop.permute.xlu2 %1189  ;;  %v1846_v16 = vpop.eup %1845 }
 0xaa1   :  { %v1195_v12 = vsel %vm239_vm2, %v1190_v10, 0  ;;  %v1031_v17 = vmul.f32 %v1846_v16, %v1838_v24 }
 0xaa2   :  { %v910_v22 = vpack.c.bf16 %v908_v9, %v908_v9  ;;  %1204 = vmatpush.bf16.msrb.mxu2 %v1195_v12 }
 0xaa3   :  { %v1033_v6 = vpack.c.bf16 %v1031_v17, %v1031_v17 }
 0xaa4   :  { %1701 = vmatmul.msk.bf16.vlgmr.msrb.gmra.mxu1 %vm171_vm1, %v910_v22 }
 0xaa5   :  { %1157 = vmatpush.bf16.xpose.msrb.mxu1 %v1148_v14 }
 0xab4   :  { %1705 = vmatmul.msk.bf16.vlgmr.msra.gmra.mxu1 %vm171_vm1, %v1033_v6 }
 0xab5   :  { %1268 = vmatpush.bf16.xpose.msra.mxu1 %v1259_v20 }
 0xac4   :  { %1709 = vmatmul.msk.bf16.vlgmr.msrb.gmra.mxu1 %vm171_vm1, %v1141_v15 }
 0xac5   :  { %1376 = vmatpush.bf16.msrb.mxu1 %v2202_v39  ;;  %v1282_v39 = vsel %vm171_vm1, %v1277_v21, 0 }
 0xad4   :  { %1713 = vmatmul.msk.bf16.vlgmr.msra.gmra.mxu1 %vm171_vm1, %v1252_v23 }
 0xae0   :  { %v1054_v27 = vpop.f32.mrf.mxu0 }
 0xae8   :  { %v1056_v28 = vpop.f32.mrf.mxu0 }
 0xaf0   :  { %v1136_v29 = vpop.f32.mrf.mxu0 }
 0xaf1   :  { %v1163_v30 = vmul.f32 0.35355338, %v1136_v29 }
 0xaf3   :  { %v1165_v31 = vsel %vm171_vm1, %v1163_v30, -inf }
 0xaf4   :  { %1166 = vmax.xlane.f32.xlu0 %v1165_v31 }
 0xaf8   :  { %v1138_v55 = vpop.f32.mrf.mxu0 }
 0xb21   :  { %v945_v35 = vpop.f32.mrf.mxu1 }
 0xb22   :  { %v949_v32 = vpack.c.bf16 %v945_v35, %v926_v57 }
 0xb24   :  { %1707 = vmatmul.msk.bf16.vlgmr.msra.gmra.mxu3 %vm171_vm1, %v949_v32 }
 0xb29   :  { %v947_v33 = vpop.f32.mrf.mxu1 }
 0xb31   :  { %v1078_v36 = vpop.f32.mrf.mxu1 }
 0xb32   :  { %v1082_v38 = vpack.c.bf16 %v1078_v36, %v1054_v27 }
 0xb34   :  { %1706 = vmatmul.msk.bf16.vlgmr.msra.gmra.mxu2 %vm171_vm1, %v1082_v38 }
 0xb35   :  { %1291 = vmatpush.bf16.xpose.msra.mxu2 %v1282_v39 }
 0xb39   :  { %v1080_v40 = vpop.f32.mrf.mxu1 }
 0xb41   :  { %v1159_v41 = vpop.f32.mrf.mxu1 }
 0xb42   :  { %v1164_v1 = vmul.f32 0.35355338, %v1159_v41 }
 0xb44   :  { %v1168_v13 = vsel %vm171_vm1, %v1164_v1, -inf }
 0xb45   :  { %1169 = vmax.xlane.f32.xlu0 %v1168_v13 }
 0xb49   :  { %v1161_v3 = vpop.f32.mrf.mxu1 }
 0xb51   :  { %v1270_v42 = vpop.f32.mrf.mxu1 }
 0xb52   :  { %v1297_v43 = vmul.f32 0.35355338, %v1270_v42 }
 0xb54   :  { %v1299_v34 = vsel %vm171_vm1, %v1297_v43, -inf }
 0xb55   :  { %1300 = vmax.xlane.f32.xlu0 %v1299_v34 }
 0xb59   :  { %v1272_v45 = vpop.f32.mrf.mxu1 }
 0xb67   :  { %v1167_v46 = vpop.xlane.xlu0 %1166 }
 0xb68   :  { %v1171_v18 = vsub.f32 %v1163_v30, %v1167_v46 }
 0xb6a   :  { %v1173_v24 = vmul.f32 1.442695, %v1171_v18 }
 0xb6c   :  { %1847 = vpow2.f32 %v1173_v24 }
 0xb72   :  { %v1848_v0 = vpop.eup %1847 }
 0xb73   :  { %v1177_v48 = vsel %vm171_vm1, %v1848_v0, 0.0 }
 0xb74   :  { %1178 = vadd.xlane.f32.xlu2 %v1177_v48 }
 0xb8c   :  { %1274 = vrot.lane.b32.xlu2 %v2247_v56, %s1928_s23 }
 0xb94   :  { %1210 = vrot.lane.b32.xlu2 %v2281_v37, %s1927_s3 }
 0xba7   :  { %v1112_v49 = vpop.f32.mrf.mxu3 }
 0xbaf   :  { %v1114_v23 = vpop.f32.mrf.mxu3 }
 0xbb7   :  { %v1095_v50 = vpop.f32.mrf.mxu2 }
 0xbb8   :  { %v1113_v2 = vadd.f32 %v1112_v49, %v1095_v50  ;;  %v1170_v51 = vpop.xlane.xlu0 %1169 }
 0xbb9   :  { %v1172_v52 = vsub.f32 %v1164_v1, %v1170_v51 }
 0xbbb   :  { %v1175_v4 = vmul.f32 1.442695, %v1172_v52 }
 0xbbd   :  { %1849 = vpow2.f32 %v1175_v4 }
 0xbbf   :  { %v1097_v15 = vpop.f32.mrf.mxu2 }
 0xbc3   :  { %v1850_v53 = vpop.eup %1849 }
 0xbc4   :  { %v1180_v54 = vsel %vm171_vm1, %v1850_v53, 0.0 }
 0xbc5   :  { %1181 = vadd.xlane.f32.xlu1 %v1180_v54 }
 0xbc8   :  { %v1301_v5 = vpop.xlane.xlu0 %1300 }
 0xbc9   :  { %v1305_v44 = vsub.f32 %v1297_v43, %v1301_v5 }
 0xbcb   :  { %v1307_v59 = vmul.f32 1.442695, %v1305_v44 }
 0xbcd   :  { %1851 = vpow2.f32 %v1307_v59 }
 0xbd3   :  { %v1852_v60 = vpop.eup %1851 }
 0xbd4   :  { %v1311_v56 = vsel %vm171_vm1, %v1852_v60, 0.0 }
 0xbd5   :  { %1312 = vadd.xlane.f32.xlu0 %v1311_v56 }
 0xbde   :  { %1344 = vrot.lane.b32.xlu1 %v2281_v37, %s1928_s23 }
 0xbe7   :  { %v1179_v61 = vpop.xlane.xlu2 %1178 }
 0xbe8   :  { %1853 = vrcp.f32 %v1179_v61 }
 0xbee   :  { %v1854_v57 = vpop.eup %1853 }
 0xbef   :  { %v1185_v62 = vmul.f32 %v1854_v57, %v1848_v0  ;;  %v1275_v63 = vpop.permute.xlu2 %1274 }
 0xbf1   :  { %v1187_v7 = vpack.c.bf16 %v1185_v62, %v1185_v62 }
 0xbf3   :  { %1710 = vmatmul.msk.bf16.vlgmr.msrb.gmra.mxu2 %vm171_vm1, %v1187_v7 }
 0xbf7   :  { %v1211_v8 = vpop.permute.xlu2 %1210 }
 0xbf8   :  { %v1216_v9 = vsel %vm239_vm2, %v1211_v8, 0 }
 0xbf9   :  { %1225 = vmatpush.bf16.msrb.mxu3 %v1216_v9 }
 0xc03   :  { %1714 = vmatmul.msk.bf16.vlgmr.msra.gmra.mxu2 %vm171_vm1, %v1275_v63 }
 0xc38   :  { %v1182_v10 = vpop.xlane.xlu1 %1181 }
 0xc39   :  { %1855 = vrcp.f32 %v1182_v10 }
 0xc3f   :  { %v1856_v11 = vpop.eup %1855 }
 0xc40   :  { %v1186_v12 = vmul.f32 %v1856_v11, %v1850_v53  ;;  %v1765_v11 = vld [vmem:[#allocation2] sm:$0xff] }
 0xc42   :  { %v1188_v22 = vpack.c.bf16 %v1186_v12, %v1186_v12  ;;  %v1774_v12 = vld [vmem:[%s2416_s13 + $0x38] sm:$0xff] }
 0xc44   :  { %1711 = vmatmul.msk.bf16.vlgmr.msrb.gmra.mxu3 %vm171_vm1, %v1188_v22 }
 0xc48   :  { %v1313_v38 = vpop.xlane.xlu0 %1312 }
 0xc50   :  { %v1345_v37 = vpop.permute.xlu1 %1344 }
 0xc51   :  { %v1350_v14 = vsel %vm239_vm2, %v1345_v37, 0 }
 0xc52   :  { %1359 = vmatpush.bf16.msrb.mxu0 %v1350_v14  ;;  %v1773_v14 = vld [vmem:[%s2416_s13 + $0x30] sm:$0xff] }
 0xc76   :  { %v1206_v16 = vpop.f32.mrf.mxu2 }
 0xc7e   :  { %v1208_v17 = vpop.f32.mrf.mxu2 }
 0xc86   :  { %v1293_v19 = vpop.f32.mrf.mxu2 }
 0xc87   :  { %v1298_v6 = vmul.f32 0.35355338, %v1293_v19  ;;  %v1772_v19 = vld [vmem:[%s2416_s13 + $0x28] sm:$0xff] }
 0xc89   :  { %v1302_v20 = vsel %vm171_vm1, %v1298_v6, -inf }
 0xc8a   :  { %1303 = vmax.xlane.f32.xlu2 %v1302_v20 }
 0xc8e   :  { %v1295_v21 = vpop.f32.mrf.mxu2 }
 0xc8f   :  { %v1771_v21 = vld [vmem:[%s2416_s13 + $0x20] sm:$0xff] }
 0xcc7   :  { %v1227_v27 = vpop.f32.mrf.mxu3 }
 0xcc8   :  { %v1231_v28 = vpack.c.bf16 %v1227_v27, %v1206_v16 }
 0xcca   :  { %1712 = vmatmul.msk.bf16.vlgmr.msra.gmra.mxu0 %vm171_vm1, %v1231_v28 }
 0xccf   :  { %v1229_v29 = vpop.f32.mrf.mxu3 }
 0xcfd   :  { %v1304_v30 = vpop.xlane.xlu2 %1303 }
 0xcfe   :  { %v1306_v31 = vsub.f32 %v1298_v6, %v1304_v30 }
 0xd00   :  { %v1309_v55 = vmul.f32 1.442695, %v1306_v31 }
 0xd02   :  { %1857 = vpow2.f32 %v1309_v55 }
 0xd08   :  { %v1858_v35 = vpop.eup %1857 }
 0xd09   :  { %v1314_v32 = vsel %vm171_vm1, %v1858_v35, 0.0 }
 0xd0a   :  { %1315 = vadd.xlane.f32.xlu0 %v1314_v32  ;;  %v1787_v32 = vld [vmem:[%s2410_s7] ss:$0 sm:$0xff] }
 0xd1e   :  { %1323 = vrot.lane.b32.xlu0 %v2256_v58, %s1928_s23 }
 0xd47   :  { %v1244_v33 = vpop.f32.mrf.mxu0 }
 0xd48   :  { %v1249_v36 = vadd.f32 %v1244_v33, %v1113_v2  ;;  %v1115_v2 = vadd.f32 %v1114_v23, %v1097_v15 }
 0xd4f   :  { %v1246_v58 = vpop.f32.mrf.mxu0 }
 0xd50   :  { %v1250_v52 = vadd.f32 %v1246_v58, %v1115_v2  ;;  %v1768_v58 = vld [vmem:[%s2416_s13 + $0x8] sm:$0xff] }
 0xd7d   :  { %v1316_v39 = vpop.xlane.xlu0 %1315 }
 0xd7e   :  { %1859 = vrcp.f32 %v1316_v39  ;;  %v1788_v39 = vld [vmem:[%s2411_s8] ss:$0 sm:$0xff] }
 0xd7f   :  { %1861 = vrcp.f32 %v1313_v38 }
 0xd84   :  { %v1860_v40 = vpop.eup %1859 }
 0xd85   :  { %v1320_v41 = vmul.f32 %v1860_v40, %v1858_v35  ;;  %v1862_v13 = vpop.eup %1861 }
 0xd86   :  { %v1319_v3 = vmul.f32 %v1862_v13, %v1852_v60 }
 0xd87   :  { %v1322_v1 = vpack.c.bf16 %v1320_v41, %v1320_v41 }
 0xd88   :  { %v1321_v34 = vpack.c.bf16 %v1319_v3, %v1319_v3 }
 0xd89   :  { %1716 = vmatmul.msk.bf16.vlgmr.msrb.gmra.mxu0 %vm171_vm1, %v1322_v1 }
 0xd90   :  { %v1324_v42 = vpop.permute.xlu0 %1323 }
 0xd91   :  { %v1329_v43 = vsel %vm239_vm2, %v1324_v42, 0 }
 0xd92   :  { %1338 = vmatpush.bf16.msra.mxu3 %v1329_v43  ;;  %v1770_v43 = vld [vmem:[%s2416_s13 + $0x18] sm:$0xff] }
 0xd95   :  { %1715 = vmatmul.msk.bf16.vlgmr.msra.gmra.mxu3 %vm171_vm1, %v1321_v34  ;;  %v1769_v34 = vld [vmem:[%s2416_s13 + $0x10] sm:$0xff] }
 0xd96   :  { %1552 = vmatpush.bf16.msrb.mxu3 %v1774_v12 }
 0xd9a   :  { %1553 = vmatpush.bf16.msrb.mxu3 %v1773_v14 }
 0xd9e   :  { %1554 = vmatpush.bf16.msrb.mxu3 %v1772_v19 }
 0xda2   :  { %1555 = vmatpush.bf16.msrb.mxu3 %v1771_v21 }
 0xda6   :  { %1556 = vmatpush.bf16.msrb.mxu3 %v1770_v43 }
 0xdaa   :  { %1557 = vmatpush.bf16.msrb.mxu3 %v1769_v34 }
 0xdae   :  { %1558 = vmatpush.bf16.msrb.mxu3 %v1768_v58 }
 0xe06   :  { %v1361_v45 = vpop.f32.mrf.mxu0 }
 0xe0e   :  { %v1363_v46 = vpop.f32.mrf.mxu0 }
 0xe18   :  { %v1340_v18 = vpop.f32.mrf.mxu3 }
 0xe19   :  { %v1365_v24 = vpack.c.bf16 %v1361_v45, %v1340_v18  ;;  %v1767_v45 = vld [vmem:[%s2416_s13] sm:$0xff] }
 0xe1a   :  { %1559 = vmatpush.bf16.msrb.mxu3 %v1767_v45  ;;  %v1789_v18 = vld [vmem:[%s2415_s12] ss:$0 sm:$0xff] }
 0xe1b   :  { %1717 = vmatmul.msk.bf16.vlgmr.msrb.gmra.mxu1 %vm171_vm1, %v1365_v24 }
 0xe20   :  { %v1342_v0 = vpop.f32.mrf.mxu3 }
 0xe98   :  { %v1378_v48 = vpop.f32.mrf.mxu1 }
 0xe99   :  { %v1383_v49 = vadd.f32 %v1378_v48, %v1249_v36 }
 0xe9b   :  { %v1385_v50 = vadd.f32 %v1383_v49, %v2225_v25 }
 0xe9d   :  { %v1389_v51 = vsel %vm87_vm0, %v1385_v50, 0.0 }
 0xe9e   :  { %1390 = vadd.xlane.f32.xlu2 %v1389_v51  ;;  %v1790_v51 = vld [vmem:[%s2417_s14] ss:$0 sm:$0xff] }
 0xea0   :  { %v1380_v4 = vpop.f32.mrf.mxu1 }
 0xea1   :  { %v1384_v53 = vadd.f32 %v1380_v4, %v1250_v52 }
 0xea3   :  { %v1386_v54 = vadd.f32 %v1384_v53, %v2227_v26  ;;  %v1766_v26 = vld [vmem:[#allocation2 + $0x8] sm:$0xff] }
 0xea4   :  { %1473 = vmatpush.bf16.msrb.mxu2 %v1766_v26 }
 0xea5   :  { %v1392_v5 = vsel %vm87_vm0, %v1386_v54, 0.0 }
 0xea6   :  { %1393 = vadd.xlane.f32.xlu0 %v1392_v5 }
 0xea8   :  { %1474 = vmatpush.bf16.msrb.mxu2 %v1765_v11 }
 0xf11   :  { %v1391_v44 = vpop.xlane.xlu2 %1390 }
 0xf12   :  { %v1395_v59 = vmul.f32 %v1391_v44, %v2211_v47 }
 0xf14   :  { %v1397_v60 = vsub.f32 %v1385_v50, %v1395_v59 }
 0xf16   :  { %v1399_v56 = vmul.f32 %v1397_v60, %v1397_v60 }
 0xf18   :  { %v1401_v61 = vsel %vm87_vm0, %v1399_v56, 0.0 }
 0xf19   :  { %v1394_v25 = vpop.xlane.xlu0 %1393  ;;  %1402 = vadd.xlane.f32.xlu2 %v1401_v61 }
 0xf1a   :  { %v1396_v57 = vmul.f32 %v1394_v25, %v2211_v47 }
 0xf1c   :  { %v1398_v62 = vsub.f32 %v1386_v54, %v1396_v57 }
 0xf1e   :  { %v1400_v63 = vmul.f32 %v1398_v62, %v1398_v62 }
 0xf20   :  { %v1404_v7 = vsel %vm87_vm0, %v1400_v63, 0.0 }
 0xf21   :  { %1405 = vadd.xlane.f32.xlu2 %v1404_v7 }
 0xf8c   :  { %v1403_v8 = vpop.xlane.xlu2 %1402 }
 0xf8d   :  { %v1407_v9 = vmul.f32 %v1403_v8, %v2211_v47 }
 0xf8f   :  { %v1409_v10 = vadd.f32 1e-05, %v1407_v9 }
 0xf91   :  { %1863 = vrsqrt.f32 %v1409_v10  ;;  %vm1417_vm11 = vweird.f32 %v1409_v10 }
 0xf94   :  { %v1406_v22 = vpop.xlane.xlu2 %1405 }
 0xf95   :  { %v1408_v37 = vmul.f32 %v1406_v22, %v2211_v47 }
 0xf97   :  { %v1864_v15 = vpop.eup %1863  ;;  %v1410_v16 = vadd.f32 1e-05, %v1408_v37 }
 0xf98   :  { %v1412_v17 = vmul.f32 %v1864_v15, %v1409_v10  ;;  %vm1418_vm10 = vweird.f32 %v1864_v15 }
 0xf99   :  { %1865 = vrsqrt.f32 %v1410_v16  ;;  %vm1419_vm12 = vmor %vm1417_vm11, %vm1418_vm10  ;;  %vm1427_vm14 = vweird.f32 %v1410_v16 }
 0xf9a   :  { %v1413_v6 = vmul.f32 %v1864_v15, %v1412_v17 }
 0xf9c   :  { %v1414_v20 = vmul.f32 0.5, %v1413_v6 }
 0xf9e   :  { %v1415_v23 = vsub.f32 1.5, %v1414_v20 }
 0xf9f   :  { %v1866_v27 = vpop.eup %1865 }
 0xfa0   :  { %v1416_v28 = vmul.f32 %v1864_v15, %v1415_v23  ;;  %v1422_v29 = vmul.f32 %v1866_v27, %v1410_v16  ;;  %vm1428_vm13 = vweird.f32 %v1866_v27 }
 0xfa1   :  { %vm1429_vm15 = vmor %vm1427_vm14, %vm1428_vm13 }
 0xfa2   :  { %v1423_v30 = vmul.f32 %v1866_v27, %v1422_v29  ;;  %v1420_v31 = vsel %vm1419_vm12, %v1864_v15, %v1416_v28 }
 0xfa3   :  { %v1431_v33 = vmul.f32 %v1420_v31, %v1397_v60 }
 0xfa4   :  { %v1424_v55 = vmul.f32 0.5, %v1423_v30 }
 0xfa5   :  { %v1436_v40 = vmul.f32 %v1787_v32, %v1431_v33 }
 0xfa6   :  { %v1425_v35 = vsub.f32 1.5, %v1424_v55 }
 0xfa7   :  { %v1441_v13 = vadd.f32 %v1788_v39, %v1436_v40 }
 0xfa8   :  { %v1426_v36 = vmul.f32 %v1866_v27, %v1425_v35 }
 0xfaa   :  { %v1430_v38 = vsel %vm1429_vm15, %v1866_v27, %v1426_v36  ;;  %v1791_v27 = vld [vmem:[%s2412_s9] ss:$0 sm:$0xff]  ;;  %s1930_s9 = smov [#allocation5]  }
 0xfab   :  { %v1432_v41 = vmul.f32 %v1430_v38, %v1398_v62  ;;  %s1630_s5 = sshll.u32 %s1930_s9, 4  ;;  %s1631_s5 = int_to_ptr.vmem [resolvable:$true] %s1630_s5 }
 0xfad   :  { %v1437_v1 = vmul.f32 %v1787_v32, %v1432_v41 }
 0xfaf   :  { %v1442_v3 = vadd.f32 %v1788_v39, %v1437_v1 }
 0xfb1   :  { %v1443_v42 = vpack.c.bf16 %v1442_v3, %v1441_v13 }
 0xfb3   :  { %1726 = vmatmul.msk.bf16.vlgmr.msrb.gmra.mxu2 %vm87_vm0, %v1443_v42 }
0x1036   :  { %v1476_v46 = vpop.f32.mrf.mxu2 }
0x1037   :  { %v1477_v24 = vadd.f32 %v1789_v18, %v1476_v46 }
0x1039   :  { %v1481_v49 = vmax.f32 %v1477_v24, 0.0 }
0x103e   :  { %v1478_v0 = vpop.f32.mrf.mxu2 }
0x103f   :  { %v1479_v48 = vadd.f32 %v1789_v18, %v1478_v0 }
0x1041   :  { %v1482_v50 = vmax.f32 %v1479_v48, 0.0 }
0x1043   :  { %v1483_v2 = vpack.c.bf16 %v1482_v50, %v1481_v49 }
0x1045   :  { %1560 = vmatmul.bf16.vlgmr.msrb.gmra.mxu3 %v1483_v2 }
0x10c8   :  { %v1561_v52 = vpop.f32.mrf.mxu3 }
0x10c9   :  { %v1562_v4 = vadd.f32 %v1790_v51, %v1561_v52 }
0x10cb   :  { %v1566_v53 = vadd.f32 %v1562_v4, %v1441_v13 }
0x10cd   :  { %v1570_v54 = vsel %vm87_vm0, %v1566_v53, 0.0 }
0x10ce   :  { %1571 = vadd.xlane.f32.xlu1 %v1570_v54 }
0x10d0   :  { %v1563_v5 = vpop.f32.mrf.mxu3 }
0x10d1   :  { %v1564_v44 = vadd.f32 %v1790_v51, %v1563_v5 }
0x10d3   :  { %v1567_v59 = vadd.f32 %v1564_v44, %v1442_v3 }
0x10d5   :  { %v1573_v60 = vsel %vm87_vm0, %v1567_v59, 0.0 }
0x10d6   :  { %1574 = vadd.xlane.f32.xlu2 %v1573_v60 }
0x1141   :  { %v1572_v56 = vpop.xlane.xlu1 %1571 }
0x1142   :  { %v1576_v61 = vmul.f32 %v1572_v56, %v2211_v47 }
0x1144   :  { %v1578_v25 = vsub.f32 %v1566_v53, %v1576_v61 }
0x1146   :  { %v1580_v57 = vmul.f32 %v1578_v25, %v1578_v25 }
0x1148   :  { %v1582_v62 = vsel %vm87_vm0, %v1580_v57, 0.0 }
0x1149   :  { %v1575_v63 = vpop.xlane.xlu2 %1574  ;;  %1583 = vadd.xlane.f32.xlu2 %v1582_v62 }
0x114a   :  { %v1577_v7 = vmul.f32 %v1575_v63, %v2211_v47 }
0x114c   :  { %v1579_v26 = vsub.f32 %v1567_v59, %v1577_v7 }
0x114e   :  { %v1581_v8 = vmul.f32 %v1579_v26, %v1579_v26 }
0x1150   :  { %v1585_v9 = vsel %vm87_vm0, %v1581_v8, 0.0 }
0x1151   :  { %1586 = vadd.xlane.f32.xlu2 %v1585_v9 }
0x11bc   :  { %v1584_v10 = vpop.xlane.xlu2 %1583 }
0x11bd   :  { %v1588_v11 = vmul.f32 %v1584_v10, %v2211_v47 }
0x11bf   :  { %v1590_v12 = vadd.f32 1e-05, %v1588_v11 }
0x11c1   :  { %1867 = vrsqrt.f32 %v1590_v12  ;;  %vm1598_vm2 = vweird.f32 %v1590_v12 }
0x11c4   :  { %v1587_v22 = vpop.xlane.xlu2 %1586 }
0x11c5   :  { %v1589_v37 = vmul.f32 %v1587_v22, %v2211_v47  ;;  %v1792_v47 = vld [vmem:[%s2413_s10] ss:$0 sm:$0xff]  ;;  %s1931_s10 = smov 128  }
0x11c7   :  { %v1868_v14 = vpop.eup %1867  ;;  %v1591_v15 = vadd.f32 1e-05, %v1589_v37 }
0x11c8   :  { %v1593_v16 = vmul.f32 %v1868_v14, %v1590_v12  ;;  %vm1599_vm1 = vweird.f32 %v1868_v14 }
0x11c9   :  { %1869 = vrsqrt.f32 %v1591_v15  ;;  %vm1600_vm3 = vmor %vm1598_vm2, %vm1599_vm1  ;;  %vm1608_vm5 = vweird.f32 %v1591_v15 }
0x11ca   :  { %v1594_v17 = vmul.f32 %v1868_v14, %v1593_v16 }
0x11cc   :  { %v1595_v19 = vmul.f32 0.5, %v1594_v17 }
0x11ce   :  { %v1596_v6 = vsub.f32 1.5, %v1595_v19 }
0x11cf   :  { %v1870_v20 = vpop.eup %1869 }
0x11d0   :  { %v1597_v21 = vmul.f32 %v1868_v14, %v1596_v6  ;;  %v1603_v23 = vmul.f32 %v1870_v20, %v1591_v15  ;;  %vm1609_vm4 = vweird.f32 %v1870_v20 }
0x11d1   :  { %vm1610_vm6 = vmor %vm1608_vm5, %vm1609_vm4 }
0x11d2   :  { %v1601_v28 = vsel %vm1600_vm3, %v1868_v14, %v1597_v21  ;;  %v1604_v29 = vmul.f32 %v1870_v20, %v1603_v23 }
0x11d3   :  { %v1612_v30 = vmul.f32 %v1601_v28, %v1578_v25 }
0x11d4   :  { %v1605_v31 = vmul.f32 0.5, %v1604_v29 }
0x11d5   :  { %v1617_v55 = vmul.f32 %v1791_v27, %v1612_v30 }
0x11d6   :  { %v1606_v35 = vsub.f32 1.5, %v1605_v31 }
0x11d7   :  { %v1622_v32 = vadd.f32 %v1792_v47, %v1617_v55 }
0x11d8   :  { %v1607_v33 = vmul.f32 %v1870_v20, %v1606_v35 }
0x11d9   :  { %1624 = vst.msk [vmem:[#allocation5] sm:$0xff] %vm87_vm0, %v1622_v32 }
0x11da   :  { %v1611_v36 = vsel %vm1610_vm6, %v1870_v20, %v1607_v33 }
0x11db   :  { %v1613_v38 = vmul.f32 %v1611_v36, %v1579_v26 }
0x11dd   :  { %v1618_v39 = vmul.f32 %v1791_v27, %v1613_v38 }
0x11df   :  { %v1623_v40 = vadd.f32 %v1792_v47, %v1618_v39 }
0x11e1   :  { %1625 = vst.msk [vmem:[#allocation5 + $0x8] sm:$0xff] %vm87_vm0, %v1623_v40 }
0x11e2   :  { %1638 = dma.vmem_to_hbm [thread:$0]  %s1631_s5, 256, %s1633_s20, [#allocation4], %s1931_s10, %s1931_s10, %s1932_s0  }
0x11e3   :  { %1921 = dma.done.wait [#allocation4], 256  }
0x11e4   :  { %1922 = vsyncadd [#allocation4], 4294967040 }
0x11e5   :  { %1643 = vsyncpa [#allocation3], 1 }
0x11e6   :  { %1644 = vsyncpa [#allocation4], 1 }

</bundles_post_ra>
